<compile_context>
chip_gen: v5e
topology: v5e:2x2
jax: 0.10.0
libtpu: 0.0.40
codegen_flags: <defaults>
</compile_context>

<pallas_src>
import functools

import jax
import jax.numpy as jnp
from jax import lax
from jax.experimental import pallas as pl
from jax.experimental.pallas import tpu as pltpu

# ---------------- small EVA02-style config ----------------
B = 2          # batch
C_IN = 3       # image channels
IMG = 16       # image H = W
PATCH = 8      # patch size -> 2x2 = 4 patches
DIM = 32       # embed dim
HEADS = 4
HEAD_DIM = DIM // HEADS
DEPTH = 2      # transformer blocks
MLP_HIDDEN = 64
EPS = 1e-6


def _full_spec(shape):
    # whole-array block (tiny shapes: everything fits in VMEM)
    return pl.BlockSpec(shape, lambda i: (0,) * len(shape))


def _ln(x, g, b):
    # layernorm over the last dim, f32 math
    mu = jnp.mean(x, axis=-1, keepdims=True)
    var = jnp.mean((x - mu) ** 2, axis=-1, keepdims=True)
    return (x - mu) * lax.rsqrt(var + EPS) * g + b


# ---------------- Pallas kernels ----------------
def _patch_embed_kernel(x_ref, w_ref, b_ref, o_ref):
    x = x_ref[...].astype(jnp.bfloat16)
    acc = jnp.dot(x, w_ref[...], preferred_element_type=jnp.float32)
    o_ref[...] = (acc + b_ref[...]).astype(o_ref.dtype)


def patch_embed(x, w, b):
    # x: (M, K) f32, w: (K, N) bf16, b: (N,) f32 -> (M, N) f32
    M, K = x.shape
    N = w.shape[1]
    return pl.pallas_call(
        _patch_embed_kernel,
        out_shape=jax.ShapeDtypeStruct((M, N), jnp.float32),
        grid=(1,),
        in_specs=[_full_spec((M, K)), _full_spec((K, N)), _full_spec((1, N))],
        out_specs=_full_spec((M, N)),
    )(x, w, b.reshape(1, N))


def _attn_block_kernel(tok_ref, g_ref, b_ref, wqkv_ref, bqkv_ref, wo_ref, bo_ref,
                       out_ref, *, heads, scale):
    # One full pre-norm attention sub-block for one batch element:
    #   out = tok + (softmax(LN(tok) Wq (LN(tok) Wk)^T * scale) (LN(tok) Wv)) Wo + bo
    tok = tok_ref[0].astype(jnp.float32)                       # (T, D)
    D = tok.shape[1]
    Dh = D // heads

    x = _ln(tok, g_ref[...], b_ref[...])                       # (T, D)
    # fused QKV projection: single lane-dense (T, 3D) slab
    qkv = jnp.dot(x.astype(jnp.bfloat16), wqkv_ref[...],
                  preferred_element_type=jnp.float32) + bqkv_ref[...]

    # TODO(synk): EVA02 applies rotary position embedding to q/k (excluding cls);
    # omitted here, learned absolute pos_embed is used instead.
    head_outs = []
    for h in range(heads):                                     # static unroll, all in vregs
        q = qkv[:, h * Dh:(h + 1) * Dh] * scale                # (T, Dh)
        k = qkv[:, D + h * Dh:D + (h + 1) * Dh]                # (T, Dh)
        v = qkv[:, 2 * D + h * Dh:2 * D + (h + 1) * Dh]        # (T, Dh)
        # q k^T without materializing a transpose: contract last dims of both
        s = lax.dot_general(q, k, (((1,), (1,)), ((), ())),
                            preferred_element_type=jnp.float32)  # (T, T)
        s = s - jnp.max(s, axis=-1, keepdims=True)
        p = jnp.exp(s)
        p = p * pl.reciprocal(jnp.sum(p, axis=-1, keepdims=True), approx=True)
        head_outs.append(jnp.dot(p, v, preferred_element_type=jnp.float32))  # (T, Dh)

    o = jnp.concatenate(head_outs, axis=-1)                    # (T, D)
    proj = jnp.dot(o.astype(jnp.bfloat16), wo_ref[...],
                   preferred_element_type=jnp.float32) + bo_ref[...]
    out_ref[0] = (tok + proj).astype(out_ref.dtype)


def attn_block(tok, blk):
    Bn, T, D = tok.shape
    kern = functools.partial(_attn_block_kernel, heads=HEADS, scale=HEAD_DIM ** -0.5)
    tok_spec = pl.BlockSpec((1, T, D), lambda b: (b, 0, 0))
    fixed = lambda shape: pl.BlockSpec(shape, lambda b: (0, 0))
    return pl.pallas_call(
        kern,
        out_shape=jax.ShapeDtypeStruct((Bn, T, D), tok.dtype),
        grid=(Bn,),
        in_specs=[tok_spec,
                  fixed((1, D)), fixed((1, D)),
                  fixed((D, 3 * D)), fixed((1, 3 * D)),
                  fixed((D, D)), fixed((1, D))],
        out_specs=tok_spec,
        compiler_params=pltpu.CompilerParams(dimension_semantics=("parallel",)),
    )(tok,
      blk['ln1_g'].reshape(1, D), blk['ln1_b'].reshape(1, D),
      blk['wqkv'], blk['bqkv'].reshape(1, 3 * D),
      blk['wo'], blk['bo'].reshape(1, D))


def _mlp_block_kernel(tok_ref, g_ref, b_ref, w12_ref, b12_ref,
                      ng_ref, nb_ref, w2_ref, b2_ref, out_ref, *, hidden):
    # EVA02 SwiGLU MLP sub-block:
    #   h  = LN2(tok)
    #   g,u = h @ [Wg | Wx] + [bg | bx]      (single lane-dense matmul)
    #   m  = LN_inner(SiLU(g) * u) @ W2 + b2
    #   out = tok + m
    tok = tok_ref[0].astype(jnp.float32)                       # (T, D)
    x = _ln(tok, g_ref[...], b_ref[...])
    gu = jnp.dot(x.astype(jnp.bfloat16), w12_ref[...],
                 preferred_element_type=jnp.float32) + b12_ref[...]   # (T, 2H)
    gate = gu[:, :hidden]
    up = gu[:, hidden:]
    h = (gate * jax.nn.sigmoid(gate)) * up
    h = _ln(h, ng_ref[...], nb_ref[...])
    m = jnp.dot(h.astype(jnp.bfloat16), w2_ref[...],
                preferred_element_type=jnp.float32) + b2_ref[...]
    out_ref[0] = (tok + m).astype(out_ref.dtype)


def mlp_block(tok, blk):
    Bn, T, D = tok.shape
    Hd = MLP_HIDDEN
    kern = functools.partial(_mlp_block_kernel, hidden=Hd)
    tok_spec = pl.BlockSpec((1, T, D), lambda b: (b, 0, 0))
    fixed = lambda shape: pl.BlockSpec(shape, lambda b: (0, 0))
    return pl.pallas_call(
        kern,
        out_shape=jax.ShapeDtypeStruct((Bn, T, D), tok.dtype),
        grid=(Bn,),
        in_specs=[tok_spec,
                  fixed((1, D)), fixed((1, D)),
                  fixed((D, 2 * Hd)), fixed((1, 2 * Hd)),
                  fixed((1, Hd)), fixed((1, Hd)),
                  fixed((Hd, D)), fixed((1, D))],
        out_specs=tok_spec,
        compiler_params=pltpu.CompilerParams(dimension_semantics=("parallel",)),
    )(tok,
      blk['ln2_g'].reshape(1, D), blk['ln2_b'].reshape(1, D),
      blk['mlp_w12'], blk['mlp_b12'].reshape(1, 2 * Hd),
      blk['mlp_ng'].reshape(1, Hd), blk['mlp_nb'].reshape(1, Hd),
      blk['mlp_w2'], blk['mlp_b2'].reshape(1, D))


def _final_norm_pool_kernel(tok_ref, g_ref, b_ref, o_ref):
    # final LN + mean-pool over patch tokens (excluding cls token at index 0)
    x = tok_ref[...].astype(jnp.float32)                       # (B, T, D)
    y = _ln(x, g_ref[...], b_ref[...])
    T = x.shape[1]
    mask = (lax.broadcasted_iota(jnp.int32, (T, 1), 0) > 0).astype(jnp.float32)
    o_ref[...] = (jnp.sum(y * mask, axis=1) / (T - 1)).astype(o_ref.dtype)


def final_norm_pool(tok, g, b):
    Bn, T, D = tok.shape
    return pl.pallas_call(
        _final_norm_pool_kernel,
        out_shape=jax.ShapeDtypeStruct((Bn, D), jnp.float32),
        grid=(1,),
        in_specs=[_full_spec((Bn, T, D)), _full_spec((1, D)), _full_spec((1, D))],
        out_specs=_full_spec((Bn, D)),
    )(tok, g.reshape(1, D), b.reshape(1, D))


# ---------------- parameter init (deterministic, synthetic) ----------------
def init_params(key):
    n_patches = (IMG // PATCH) ** 2
    T = n_patches + 1
    keys = iter(jax.random.split(key, 64))

    def w(shape, std=0.02, dtype=jnp.bfloat16):
        # matmul weights stored in bf16 (MXU operands); accumulation stays f32
        return (jax.random.normal(next(keys), shape, jnp.float32) * std).astype(dtype)

    params = {
        # conv weight (DIM, C, p, p) stored pre-flattened/transposed as (C*p*p, DIM)
        'patch_w': w((C_IN * PATCH * PATCH, DIM)),
        'patch_b': jnp.zeros((DIM,), jnp.float32),
        'cls_token': w((1, 1, DIM), dtype=jnp.float32),
        'pos_embed': w((1, T, DIM), dtype=jnp.float32),
        'norm_g': jnp.ones((DIM,), jnp.float32),
        'norm_b': jnp.zeros((DIM,), jnp.float32),
        'blocks': [],
    }
    for _ in range(DEPTH):
        blk = {
            'ln1_g': jnp.ones((DIM,), jnp.float32), 'ln1_b': jnp.zeros((DIM,), jnp.float32),
            # fused [q | k | v] projection; k has no bias in EVA02 -> its bias slice stays 0
            'wqkv': w((DIM, 3 * DIM)),
            'bqkv': jnp.zeros((3 * DIM,), jnp.float32),
            'wo': w((DIM, DIM)), 'bo': jnp.zeros((DIM,), jnp.float32),
            'ln2_g': jnp.ones((DIM,), jnp.float32), 'ln2_b': jnp.zeros((DIM,), jnp.float32),
            # fused SwiGLU [gate | up] projection
            'mlp_w12': w((DIM, 2 * MLP_HIDDEN)),
            'mlp_b12': jnp.zeros((2 * MLP_HIDDEN,), jnp.float32),
            'mlp_ng': jnp.ones((MLP_HIDDEN,), jnp.float32),
            'mlp_nb': jnp.zeros((MLP_HIDDEN,), jnp.float32),
            'mlp_w2': w((MLP_HIDDEN, DIM)), 'mlp_b2': jnp.zeros((DIM,), jnp.float32),
        }
        params['blocks'].append(blk)
    return params


# ---------------- forward (EVA02, num_classes=0 -> pooled features) ----------------
def eva02_forward(params, x):
    Bn, C, H, W = x.shape
    nh, nw = H // PATCH, W // PATCH
    n_patches = nh * nw

    # patch embed (conv as matmul, Pallas)
    p = x.reshape(Bn, C, nh, PATCH, nw, PATCH)
    p = p.transpose(0, 2, 4, 1, 3, 5).reshape(Bn * n_patches, C * PATCH * PATCH)
    tok = patch_embed(p, params['patch_w'], params['patch_b']).reshape(Bn, n_patches, DIM)

    # cls token + learned absolute pos embed
    cls = jnp.broadcast_to(params['cls_token'], (Bn, 1, DIM))
    tok = jnp.concatenate([cls, tok], axis=1) + params['pos_embed']

    # transformer blocks: 2 fused Pallas kernels per block, residuals inside kernels
    for blk in params['blocks']:
        tok = attn_block(tok, blk)
        tok = mlp_block(tok, blk)

    # final norm; num_classes=0 -> head is Identity, return avg-pooled patch features
    return final_norm_pool(tok, params['norm_g'], params['norm_b'])   # (B, DIM)


if __name__ == "__main__":
    key = jax.random.PRNGKey(0)
    pkey, xkey = jax.random.split(key)
    params = init_params(pkey)
    x = jax.random.normal(xkey, (B, C_IN, IMG, IMG), jnp.float32)

    fwd = jax.jit(eva02_forward)
    out = fwd(params, x)
    jax.block_until_ready(out)
    assert out.shape == (B, DIM) and out.dtype == jnp.float32
    print("KERNEL_OK")
</pallas_src>

<mosaic_0001>
module attributes {stable_mosaic.version = 11 : i64} {
  func.func @_patch_embed_kernel(%arg0: i32, %arg1: memref<8x192xf32, #tpu.memory_space<vmem>>, %arg2: memref<192x32xbf16, #tpu.memory_space<vmem>>, %arg3: memref<1x32xf32, #tpu.memory_space<vmem>>, %arg4: memref<8x32xf32, #tpu.memory_space<vmem>>) attributes {dimension_semantics = [#tpu.dimension_semantics<arbitrary>], iteration_bounds = array<i64: 1>, scalar_prefetch = 0 : i64, scratch_operands = 0 : i64, tpu.core_type = #tpu.core_type<tc>, window_params = [{pipeline_mode = #tpu.pipeline_mode<synchronous>, transform_indices = @transform_0, window_bounds = array<i64: 8, 192>}, {pipeline_mode = #tpu.pipeline_mode<synchronous>, transform_indices = @transform_1, window_bounds = array<i64: 192, 32>}, {pipeline_mode = #tpu.pipeline_mode<synchronous>, transform_indices = @transform_2, window_bounds = array<i64: 1, 32>}, {pipeline_mode = #tpu.pipeline_mode<synchronous>, transform_indices = @transform_3, window_bounds = array<i64: 8, 32>}]} {
    %c0 = arith.constant 0 : index
    %c0_0 = arith.constant 0 : index
    %0 = vector.load %arg1[%c0, %c0_0] : memref<8x192xf32, #tpu.memory_space<vmem>>, vector<8x192xf32>
    %1 = arith.truncf %0 : vector<8x192xf32> to vector<8x192xbf16>
    %c0_1 = arith.constant 0 : index
    %c0_2 = arith.constant 0 : index
    %2 = vector.load %arg2[%c0_1, %c0_2] : memref<192x32xbf16, #tpu.memory_space<vmem>>, vector<192x32xbf16>
    %cst = arith.constant dense<0.000000e+00> : vector<8x32xf32>
    %3 = tpu.matmul %1, %2, %cst {dimension_numbers = #tpu.dot_dimension_numbers<[1], [0], [0], [1], [0, 0, 1, 1], [], []>} : vector<8x192xbf16>, vector<192x32xbf16>, vector<8x32xf32> -> vector<8x32xf32>
    %c0_3 = arith.constant 0 : index
    %c0_4 = arith.constant 0 : index
    %4 = vector.load %arg3[%c0_3, %c0_4] : memref<1x32xf32, #tpu.memory_space<vmem>>, vector<1x32xf32>
    %5 = vector.broadcast %4 : vector<1x32xf32> to vector<8x32xf32>
    %6 = arith.addf %3, %5 : vector<8x32xf32>
    %c0_5 = arith.constant 0 : index
    %c0_6 = arith.constant 0 : index
    %7 = vector.load %arg4[%c0_5, %c0_6] : memref<8x32xf32, #tpu.memory_space<vmem>>, vector<8x32xf32>
    tpu.vector_store %arg4[%c0_5, %c0_6], %6 {strides = array<i32>} : memref<8x32xf32, #tpu.memory_space<vmem>>, vector<8x32xf32>,
    return
  }
  func.func @transform_0(%arg0: i32) -> (i32, i32) {
    %c0_i32 = arith.constant 0 : i32
    %c0_i32_0 = arith.constant 0 : i32
    %c0_i32_1 = arith.constant 0 : i32
    return %c0_i32, %c0_i32_0 : i32, i32
  }
  func.func @transform_1(%arg0: i32) -> (i32, i32) {
    %c0_i32 = arith.constant 0 : i32
    %c0_i32_0 = arith.constant 0 : i32
    %c0_i32_1 = arith.constant 0 : i32
    return %c0_i32, %c0_i32_0 : i32, i32
  }
  func.func @transform_2(%arg0: i32) -> (i32, i32) {
    %c0_i32 = arith.constant 0 : i32
    %c0_i32_0 = arith.constant 0 : i32
    %c0_i32_1 = arith.constant 0 : i32
    return %c0_i32, %c0_i32_0 : i32, i32
  }
  func.func @transform_3(%arg0: i32) -> (i32, i32) {
    %c0_i32 = arith.constant 0 : i32
    %c0_i32_0 = arith.constant 0 : i32
    %c0_i32_1 = arith.constant 0 : i32
    return %c0_i32, %c0_i32_0 : i32, i32
  }
}

module attributes {stable_mosaic.version = 11 : i64} {
  func.func @_attn_block_kernel(%arg0: i32, %arg1: memref<1x5x32xf32, #tpu.memory_space<vmem>>, %arg2: memref<1x32xf32, #tpu.memory_space<vmem>>, %arg3: memref<1x32xf32, #tpu.memory_space<vmem>>, %arg4: memref<32x96xbf16, #tpu.memory_space<vmem>>, %arg5: memref<1x96xf32, #tpu.memory_space<vmem>>, %arg6: memref<32x32xbf16, #tpu.memory_space<vmem>>, %arg7: memref<1x32xf32, #tpu.memory_space<vmem>>, %arg8: memref<1x5x32xf32, #tpu.memory_space<vmem>>) attributes {dimension_semantics = [#tpu.dimension_semantics<parallel>], iteration_bounds = array<i64: 2>, scalar_prefetch = 0 : i64, scratch_operands = 0 : i64, tpu.core_type = #tpu.core_type<tc>, window_params = [{transform_indices = @transform_0, window_bounds = array<i64: 1, 5, 32>}, {pipeline_mode = #tpu.pipeline_mode<synchronous>, transform_indices = @transform_1, window_bounds = array<i64: 1, 32>}, {pipeline_mode = #tpu.pipeline_mode<synchronous>, transform_indices = @transform_2, window_bounds = array<i64: 1, 32>}, {pipeline_mode = #tpu.pipeline_mode<synchronous>, transform_indices = @transform_3, window_bounds = array<i64: 32, 96>}, {pipeline_mode = #tpu.pipeline_mode<synchronous>, transform_indices = @transform_4, window_bounds = array<i64: 1, 96>}, {pipeline_mode = #tpu.pipeline_mode<synchronous>, transform_indices = @transform_5, window_bounds = array<i64: 32, 32>}, {pipeline_mode = #tpu.pipeline_mode<synchronous>, transform_indices = @transform_6, window_bounds = array<i64: 1, 32>}, {transform_indices = @transform_7, window_bounds = array<i64: 1, 5, 32>}]} {
    %c0 = arith.constant 0 : index
    %c0_0 = arith.constant 0 : index
    %c0_1 = arith.constant 0 : index
    %0 = vector.load %arg1[%c0, %c0_0, %c0_1] : memref<1x5x32xf32, #tpu.memory_space<vmem>>, vector<1x5x32xf32>
    %1 = vector.shape_cast %0 : vector<1x5x32xf32> to vector<5x32xf32>
    %c0_2 = arith.constant 0 : index
    %c0_3 = arith.constant 0 : index
    %2 = vector.load %arg2[%c0_2, %c0_3] : memref<1x32xf32, #tpu.memory_space<vmem>>, vector<1x32xf32>
    %c0_4 = arith.constant 0 : index
    %c0_5 = arith.constant 0 : index
    %3 = vector.load %arg3[%c0_4, %c0_5] : memref<1x32xf32, #tpu.memory_space<vmem>>, vector<1x32xf32>
    %cst = arith.constant dense<0.000000e+00> : vector<5xf32>
    %4 = vector.multi_reduction <add>, %1, %cst [1] : vector<5x32xf32> to vector<5xf32>
    %5 = vector.shape_cast %4 : vector<5xf32> to vector<5x1xf32>
    %cst_6 = arith.constant 3.200000e+01 : f32
    %6 = vector.broadcast %cst_6 : f32 to vector<5x1xf32>
    %7 = arith.divf %5, %6 : vector<5x1xf32>
    %8 = vector.broadcast %7 : vector<5x1xf32> to vector<5x32xf32>
    %9 = arith.subf %1, %8 : vector<5x32xf32>
    %10 = arith.mulf %9, %9 : vector<5x32xf32>
    %cst_7 = arith.constant dense<0.000000e+00> : vector<5xf32>
    %11 = vector.multi_reduction <add>, %10, %cst_7 [1] : vector<5x32xf32> to vector<5xf32>
    %12 = vector.shape_cast %11 : vector<5xf32> to vector<5x1xf32>
    %cst_8 = arith.constant 3.200000e+01 : f32
    %13 = vector.broadcast %cst_8 : f32 to vector<5x1xf32>
    %14 = arith.divf %12, %13 : vector<5x1xf32>
    %15 = vector.broadcast %7 : vector<5x1xf32> to vector<5x32xf32>
    %16 = arith.subf %1, %15 : vector<5x32xf32>
    %cst_9 = arith.constant 9.99999997E-7 : f32
    %17 = vector.broadcast %cst_9 : f32 to vector<5x1xf32>
    %18 = arith.addf %14, %17 : vector<5x1xf32>
    %19 = math.rsqrt %18 : vector<5x1xf32>
    %20 = vector.broadcast %19 : vector<5x1xf32> to vector<5x32xf32>
    %21 = arith.mulf %16, %20 : vector<5x32xf32>
    %22 = vector.broadcast %2 : vector<1x32xf32> to vector<5x32xf32>
    %23 = arith.mulf %21, %22 : vector<5x32xf32>
    %24 = vector.broadcast %3 : vector<1x32xf32> to vector<5x32xf32>
    %25 = arith.addf %23, %24 : vector<5x32xf32>
    %26 = arith.truncf %25 : vector<5x32xf32> to vector<5x32xbf16>
    %c0_10 = arith.constant 0 : index
    %c0_11 = arith.constant 0 : index
    %27 = vector.load %arg4[%c0_10, %c0_11] : memref<32x96xbf16, #tpu.memory_space<vmem>>, vector<32x96xbf16>
    %cst_12 = arith.constant dense<0.000000e+00> : vector<5x96xf32>
    %28 = tpu.matmul %26, %27, %cst_12 {dimension_numbers = #tpu.dot_dimension_numbers<[1], [0], [0], [1], [0, 0, 1, 1], [], []>} : vector<5x32xbf16>, vector<32x96xbf16>, vector<5x96xf32> -> vector<5x96xf32>
    %c0_13 = arith.constant 0 : index
    %c0_14 = arith.constant 0 : index
    %29 = vector.load %arg5[%c0_13, %c0_14] : memref<1x96xf32, #tpu.memory_space<vmem>>, vector<1x96xf32>
    %30 = vector.broadcast %29 : vector<1x96xf32> to vector<5x96xf32>
    %31 = arith.addf %28, %30 : vector<5x96xf32>
    %32 = vector.extract_strided_slice %31 {offsets = [0, 0], sizes = [5, 8], strides = [1, 1]} : vector<5x96xf32> to vector<5x8xf32>
    %cst_15 = arith.constant 0.353553385 : f32
    %33 = vector.broadcast %cst_15 : f32 to vector<5x8xf32>
    %34 = arith.mulf %32, %33 : vector<5x8xf32>
    %35 = vector.extract_strided_slice %31 {offsets = [0, 32], sizes = [5, 8], strides = [1, 1]} : vector<5x96xf32> to vector<5x8xf32>
    %36 = vector.extract_strided_slice %31 {offsets = [0, 64], sizes = [5, 8], strides = [1, 1]} : vector<5x96xf32> to vector<5x8xf32>
    %cst_16 = arith.constant dense<0.000000e+00> : vector<5x5xf32>
    %37 = tpu.matmul %34, %35, %cst_16 {dimension_numbers = #tpu.dot_dimension_numbers<[1], [1], [0], [0], [0, 0, 1, 0], [], []>} : vector<5x8xf32>, vector<5x8xf32>, vector<5x5xf32> -> vector<5x5xf32>
    %cst_17 = arith.constant dense<0xFF800000> : vector<5xf32>
    %38 = vector.multi_reduction <maximumf>, %37, %cst_17 [1] : vector<5x5xf32> to vector<5xf32>
    %39 = vector.shape_cast %38 : vector<5xf32> to vector<5x1xf32>
    %40 = vector.broadcast %39 : vector<5x1xf32> to vector<5x5xf32>
    %41 = arith.subf %37, %40 : vector<5x5xf32>
    %42 = math.exp %41 : vector<5x5xf32>
    %cst_18 = arith.constant dense<0.000000e+00> : vector<5xf32>
    %43 = vector.multi_reduction <add>, %42, %cst_18 [1] : vector<5x5xf32> to vector<5xf32>
    %44 = vector.shape_cast %43 : vector<5xf32> to vector<5x1xf32>
    %45 = tpu.reciprocal %44 {approx = true} : vector<5x1xf32> -> vector<5x1xf32>
    %46 = vector.broadcast %45 : vector<5x1xf32> to vector<5x5xf32>
    %47 = arith.mulf %42, %46 : vector<5x5xf32>
    %cst_19 = arith.constant dense<0.000000e+00> : vector<5x8xf32>
    %48 = tpu.matmul %47, %36, %cst_19 {dimension_numbers = #tpu.dot_dimension_numbers<[1], [0], [0], [1], [0, 0, 1, 1], [], []>} : vector<5x5xf32>, vector<5x8xf32>, vector<5x8xf32> -> vector<5x8xf32>
    %49 = vector.extract_strided_slice %31 {offsets = [0, 8], sizes = [5, 8], strides = [1, 1]} : vector<5x96xf32> to vector<5x8xf32>
    %cst_20 = arith.constant 0.353553385 : f32
    %50 = vector.broadcast %cst_20 : f32 to vector<5x8xf32>
    %51 = arith.mulf %49, %50 : vector<5x8xf32>
    %52 = vector.extract_strided_slice %31 {offsets = [0, 40], sizes = [5, 8], strides = [1, 1]} : vector<5x96xf32> to vector<5x8xf32>
    %53 = vector.extract_strided_slice %31 {offsets = [0, 72], sizes = [5, 8], strides = [1, 1]} : vector<5x96xf32> to vector<5x8xf32>
    %cst_21 = arith.constant dense<0.000000e+00> : vector<5x5xf32>
    %54 = tpu.matmul %51, %52, %cst_21 {dimension_numbers = #tpu.dot_dimension_numbers<[1], [1], [0], [0], [0, 0, 1, 0], [], []>} : vector<5x8xf32>, vector<5x8xf32>, vector<5x5xf32> -> vector<5x5xf32>
    %cst_22 = arith.constant dense<0xFF800000> : vector<5xf32>
    %55 = vector.multi_reduction <maximumf>, %54, %cst_22 [1] : vector<5x5xf32> to vector<5xf32>
    %56 = vector.shape_cast %55 : vector<5xf32> to vector<5x1xf32>
    %57 = vector.broadcast %56 : vector<5x1xf32> to vector<5x5xf32>
    %58 = arith.subf %54, %57 : vector<5x5xf32>
    %59 = math.exp %58 : vector<5x5xf32>
    %cst_23 = arith.constant dense<0.000000e+00> : vector<5xf32>
    %60 = vector.multi_reduction <add>, %59, %cst_23 [1] : vector<5x5xf32> to vector<5xf32>
    %61 = vector.shape_cast %60 : vector<5xf32> to vector<5x1xf32>
    %62 = tpu.reciprocal %61 {approx = true} : vector<5x1xf32> -> vector<5x1xf32>
    %63 = vector.broadcast %62 : vector<5x1xf32> to vector<5x5xf32>
    %64 = arith.mulf %59, %63 : vector<5x5xf32>
    %cst_24 = arith.constant dense<0.000000e+00> : vector<5x8xf32>
    %65 = tpu.matmul %64, %53, %cst_24 {dimension_numbers = #tpu.dot_dimension_numbers<[1], [0], [0], [1], [0, 0, 1, 1], [], []>} : vector<5x5xf32>, vector<5x8xf32>, vector<5x8xf32> -> vector<5x8xf32>
    %66 = vector.extract_strided_slice %31 {offsets = [0, 16], sizes = [5, 8], strides = [1, 1]} : vector<5x96xf32> to vector<5x8xf32>
    %cst_25 = arith.constant 0.353553385 : f32
    %67 = vector.broadcast %cst_25 : f32 to vector<5x8xf32>
    %68 = arith.mulf %66, %67 : vector<5x8xf32>
    %69 = vector.extract_strided_slice %31 {offsets = [0, 48], sizes = [5, 8], strides = [1, 1]} : vector<5x96xf32> to vector<5x8xf32>
    %70 = vector.extract_strided_slice %31 {offsets = [0, 80], sizes = [5, 8], strides = [1, 1]} : vector<5x96xf32> to vector<5x8xf32>
    %cst_26 = arith.constant dense<0.000000e+00> : vector<5x5xf32>
    %71 = tpu.matmul %68, %69, %cst_26 {dimension_numbers = #tpu.dot_dimension_numbers<[1], [1], [0], [0], [0, 0, 1, 0], [], []>} : vector<5x8xf32>, vector<5x8xf32>, vector<5x5xf32> -> vector<5x5xf32>
    %cst_27 = arith.constant dense<0xFF800000> : vector<5xf32>
    %72 = vector.multi_reduction <maximumf>, %71, %cst_27 [1] : vector<5x5xf32> to vector<5xf32>
    %73 = vector.shape_cast %72 : vector<5xf32> to vector<5x1xf32>
    %74 = vector.broadcast %73 : vector<5x1xf32> to vector<5x5xf32>
    %75 = arith.subf %71, %74 : vector<5x5xf32>
    %76 = math.exp %75 : vector<5x5xf32>
    %cst_28 = arith.constant dense<0.000000e+00> : vector<5xf32>
    %77 = vector.multi_reduction <add>, %76, %cst_28 [1] : vector<5x5xf32> to vector<5xf32>
    %78 = vector.shape_cast %77 : vector<5xf32> to vector<5x1xf32>
    %79 = tpu.reciprocal %78 {approx = true} : vector<5x1xf32> -> vector<5x1xf32>
    %80 = vector.broadcast %79 : vector<5x1xf32> to vector<5x5xf32>
    %81 = arith.mulf %76, %80 : vector<5x5xf32>
    %cst_29 = arith.constant dense<0.000000e+00> : vector<5x8xf32>
    %82 = tpu.matmul %81, %70, %cst_29 {dimension_numbers = #tpu.dot_dimension_numbers<[1], [0], [0], [1], [0, 0, 1, 1], [], []>} : vector<5x5xf32>, vector<5x8xf32>, vector<5x8xf32> -> vector<5x8xf32>
    %83 = vector.extract_strided_slice %31 {offsets = [0, 24], sizes = [5, 8], strides = [1, 1]} : vector<5x96xf32> to vector<5x8xf32>
    %cst_30 = arith.constant 0.353553385 : f32
    %84 = vector.broadcast %cst_30 : f32 to vector<5x8xf32>
    %85 = arith.mulf %83, %84 : vector<5x8xf32>
    %86 = vector.extract_strided_slice %31 {offsets = [0, 56], sizes = [5, 8], strides = [1, 1]} : vector<5x96xf32> to vector<5x8xf32>
    %87 = vector.extract_strided_slice %31 {offsets = [0, 88], sizes = [5, 8], strides = [1, 1]} : vector<5x96xf32> to vector<5x8xf32>
    %cst_31 = arith.constant dense<0.000000e+00> : vector<5x5xf32>
    %88 = tpu.matmul %85, %86, %cst_31 {dimension_numbers = #tpu.dot_dimension_numbers<[1], [1], [0], [0], [0, 0, 1, 0], [], []>} : vector<5x8xf32>, vector<5x8xf32>, vector<5x5xf32> -> vector<5x5xf32>
    %cst_32 = arith.constant dense<0xFF800000> : vector<5xf32>
    %89 = vector.multi_reduction <maximumf>, %88, %cst_32 [1] : vector<5x5xf32> to vector<5xf32>
    %90 = vector.shape_cast %89 : vector<5xf32> to vector<5x1xf32>
    %91 = vector.broadcast %90 : vector<5x1xf32> to vector<5x5xf32>
    %92 = arith.subf %88, %91 : vector<5x5xf32>
    %93 = math.exp %92 : vector<5x5xf32>
    %cst_33 = arith.constant dense<0.000000e+00> : vector<5xf32>
    %94 = vector.multi_reduction <add>, %93, %cst_33 [1] : vector<5x5xf32> to vector<5xf32>
    %95 = vector.shape_cast %94 : vector<5xf32> to vector<5x1xf32>
    %96 = tpu.reciprocal %95 {approx = true} : vector<5x1xf32> -> vector<5x1xf32>
    %97 = vector.broadcast %96 : vector<5x1xf32> to vector<5x5xf32>
    %98 = arith.mulf %93, %97 : vector<5x5xf32>
    %cst_34 = arith.constant dense<0.000000e+00> : vector<5x8xf32>
    %99 = tpu.matmul %98, %87, %cst_34 {dimension_numbers = #tpu.dot_dimension_numbers<[1], [0], [0], [1], [0, 0, 1, 1], [], []>} : vector<5x5xf32>, vector<5x8xf32>, vector<5x8xf32> -> vector<5x8xf32>
    %100 = tpu.concatenate %48, %65, %82, %99 in 1 : vector<5x8xf32>, vector<5x8xf32>, vector<5x8xf32>, vector<5x8xf32> -> vector<5x32xf32>
    %101 = arith.truncf %100 : vector<5x32xf32> to vector<5x32xbf16>
    %c0_35 = arith.constant 0 : index
    %c0_36 = arith.constant 0 : index
    %102 = vector.load %arg6[%c0_35, %c0_36] : memref<32x32xbf16, #tpu.memory_space<vmem>>, vector<32x32xbf16>
    %cst_37 = arith.constant dense<0.000000e+00> : vector<5x32xf32>
    %103 = tpu.matmul %101, %102, %cst_37 {dimension_numbers = #tpu.dot_dimension_numbers<[1], [0], [0], [1], [0, 0, 1, 1], [], []>} : vector<5x32xbf16>, vector<32x32xbf16>, vector<5x32xf32> -> vector<5x32xf32>
    %c0_38 = arith.constant 0 : index
    %c0_39 = arith.constant 0 : index
    %104 = vector.load %arg7[%c0_38, %c0_39] : memref<1x32xf32, #tpu.memory_space<vmem>>, vector<1x32xf32>
    %105 = vector.broadcast %104 : vector<1x32xf32> to vector<5x32xf32>
    %106 = arith.addf %103, %105 : vector<5x32xf32>
    %107 = arith.addf %1, %106 : vector<5x32xf32>
    %c0_40 = arith.constant 0 : index
    %c0_41 = arith.constant 0 : index
    %c0_42 = arith.constant 0 : index
    %108 = vector.load %arg8[%c0_40, %c0_41, %c0_42] : memref<1x5x32xf32, #tpu.memory_space<vmem>>, vector<1x5x32xf32>
    %109 = vector.shape_cast %108 : vector<1x5x32xf32> to vector<5x32xf32>
    %110 = vector.shape_cast %107 : vector<5x32xf32> to vector<1x5x32xf32>
    tpu.vector_store %arg8[%c0_40, %c0_41, %c0_42], %110 {strides = array<i32>} : memref<1x5x32xf32, #tpu.memory_space<vmem>>, vector<1x5x32xf32>,
    return
  }
  func.func @transform_0(%arg0: i32) -> (i32, i32, i32) {
    %c0_i32 = arith.constant 0 : i32
    %c0_i32_0 = arith.constant 0 : i32
    %c0_i32_1 = arith.constant 0 : i32
    return %arg0, %c0_i32, %c0_i32_0 : i32, i32, i32
  }
  func.func @transform_1(%arg0: i32) -> (i32, i32) {
    %c0_i32 = arith.constant 0 : i32
    %c0_i32_0 = arith.constant 0 : i32
    %c0_i32_1 = arith.constant 0 : i32
    return %c0_i32, %c0_i32_0 : i32, i32
  }
  func.func @transform_2(%arg0: i32) -> (i32, i32) {
    %c0_i32 = arith.constant 0 : i32
    %c0_i32_0 = arith.constant 0 : i32
    %c0_i32_1 = arith.constant 0 : i32
    return %c0_i32, %c0_i32_0 : i32, i32
  }
  func.func @transform_3(%arg0: i32) -> (i32, i32) {
    %c0_i32 = arith.constant 0 : i32
    %c0_i32_0 = arith.constant 0 : i32
    %c0_i32_1 = arith.constant 0 : i32
    return %c0_i32, %c0_i32_0 : i32, i32
  }
  func.func @transform_4(%arg0: i32) -> (i32, i32) {
    %c0_i32 = arith.constant 0 : i32
    %c0_i32_0 = arith.constant 0 : i32
    %c0_i32_1 = arith.constant 0 : i32
    return %c0_i32, %c0_i32_0 : i32, i32
  }
  func.func @transform_5(%arg0: i32) -> (i32, i32) {
    %c0_i32 = arith.constant 0 : i32
    %c0_i32_0 = arith.constant 0 : i32
    %c0_i32_1 = arith.constant 0 : i32
    return %c0_i32, %c0_i32_0 : i32, i32
  }
  func.func @transform_6(%arg0: i32) -> (i32, i32) {
    %c0_i32 = arith.constant 0 : i32
    %c0_i32_0 = arith.constant 0 : i32
    %c0_i32_1 = arith.constant 0 : i32
    return %c0_i32, %c0_i32_0 : i32, i32
  }
  func.func @transform_7(%arg0: i32) -> (i32, i32, i32) {
    %c0_i32 = arith.constant 0 : i32
    %c0_i32_0 = arith.constant 0 : i32
    %c0_i32_1 = arith.constant 0 : i32
    return %arg0, %c0_i32, %c0_i32_0 : i32, i32, i32
  }
}

module attributes {stable_mosaic.version = 11 : i64} {
  func.func @_mlp_block_kernel(%arg0: i32, %arg1: memref<1x5x32xf32, #tpu.memory_space<vmem>>, %arg2: memref<1x32xf32, #tpu.memory_space<vmem>>, %arg3: memref<1x32xf32, #tpu.memory_space<vmem>>, %arg4: memref<32x128xbf16, #tpu.memory_space<vmem>>, %arg5: memref<1x128xf32, #tpu.memory_space<vmem>>, %arg6: memref<1x64xf32, #tpu.memory_space<vmem>>, %arg7: memref<1x64xf32, #tpu.memory_space<vmem>>, %arg8: memref<64x32xbf16, #tpu.memory_space<vmem>>, %arg9: memref<1x32xf32, #tpu.memory_space<vmem>>, %arg10: memref<1x5x32xf32, #tpu.memory_space<vmem>>) attributes {dimension_semantics = [#tpu.dimension_semantics<parallel>], iteration_bounds = array<i64: 2>, scalar_prefetch = 0 : i64, scratch_operands = 0 : i64, tpu.core_type = #tpu.core_type<tc>, window_params = [{transform_indices = @transform_0, window_bounds = array<i64: 1, 5, 32>}, {pipeline_mode = #tpu.pipeline_mode<synchronous>, transform_indices = @transform_1, window_bounds = array<i64: 1, 32>}, {pipeline_mode = #tpu.pipeline_mode<synchronous>, transform_indices = @transform_2, window_bounds = array<i64: 1, 32>}, {pipeline_mode = #tpu.pipeline_mode<synchronous>, transform_indices = @transform_3, window_bounds = array<i64: 32, 128>}, {pipeline_mode = #tpu.pipeline_mode<synchronous>, transform_indices = @transform_4, window_bounds = array<i64: 1, 128>}, {pipeline_mode = #tpu.pipeline_mode<synchronous>, transform_indices = @transform_5, window_bounds = array<i64: 1, 64>}, {pipeline_mode = #tpu.pipeline_mode<synchronous>, transform_indices = @transform_6, window_bounds = array<i64: 1, 64>}, {pipeline_mode = #tpu.pipeline_mode<synchronous>, transform_indices = @transform_7, window_bounds = array<i64: 64, 32>}, {pipeline_mode = #tpu.pipeline_mode<synchronous>, transform_indices = @transform_8, window_bounds = array<i64: 1, 32>}, {transform_indices = @transform_9, window_bounds = array<i64: 1, 5, 32>}]} {
    %c0 = arith.constant 0 : index
    %c0_0 = arith.constant 0 : index
    %c0_1 = arith.constant 0 : index
    %0 = vector.load %arg1[%c0, %c0_0, %c0_1] : memref<1x5x32xf32, #tpu.memory_space<vmem>>, vector<1x5x32xf32>
    %1 = vector.shape_cast %0 : vector<1x5x32xf32> to vector<5x32xf32>
    %c0_2 = arith.constant 0 : index
    %c0_3 = arith.constant 0 : index
    %2 = vector.load %arg2[%c0_2, %c0_3] : memref<1x32xf32, #tpu.memory_space<vmem>>, vector<1x32xf32>
    %c0_4 = arith.constant 0 : index
    %c0_5 = arith.constant 0 : index
    %3 = vector.load %arg3[%c0_4, %c0_5] : memref<1x32xf32, #tpu.memory_space<vmem>>, vector<1x32xf32>
    %cst = arith.constant dense<0.000000e+00> : vector<5xf32>
    %4 = vector.multi_reduction <add>, %1, %cst [1] : vector<5x32xf32> to vector<5xf32>
    %5 = vector.shape_cast %4 : vector<5xf32> to vector<5x1xf32>
    %cst_6 = arith.constant 3.200000e+01 : f32
    %6 = vector.broadcast %cst_6 : f32 to vector<5x1xf32>
    %7 = arith.divf %5, %6 : vector<5x1xf32>
    %8 = vector.broadcast %7 : vector<5x1xf32> to vector<5x32xf32>
    %9 = arith.subf %1, %8 : vector<5x32xf32>
    %10 = arith.mulf %9, %9 : vector<5x32xf32>
    %cst_7 = arith.constant dense<0.000000e+00> : vector<5xf32>
    %11 = vector.multi_reduction <add>, %10, %cst_7 [1] : vector<5x32xf32> to vector<5xf32>
    %12 = vector.shape_cast %11 : vector<5xf32> to vector<5x1xf32>
    %cst_8 = arith.constant 3.200000e+01 : f32
    %13 = vector.broadcast %cst_8 : f32 to vector<5x1xf32>
    %14 = arith.divf %12, %13 : vector<5x1xf32>
    %15 = vector.broadcast %7 : vector<5x1xf32> to vector<5x32xf32>
    %16 = arith.subf %1, %15 : vector<5x32xf32>
    %cst_9 = arith.constant 9.99999997E-7 : f32
    %17 = vector.broadcast %cst_9 : f32 to vector<5x1xf32>
    %18 = arith.addf %14, %17 : vector<5x1xf32>
    %19 = math.rsqrt %18 : vector<5x1xf32>
    %20 = vector.broadcast %19 : vector<5x1xf32> to vector<5x32xf32>
    %21 = arith.mulf %16, %20 : vector<5x32xf32>
    %22 = vector.broadcast %2 : vector<1x32xf32> to vector<5x32xf32>
    %23 = arith.mulf %21, %22 : vector<5x32xf32>
    %24 = vector.broadcast %3 : vector<1x32xf32> to vector<5x32xf32>
    %25 = arith.addf %23, %24 : vector<5x32xf32>
    %26 = arith.truncf %25 : vector<5x32xf32> to vector<5x32xbf16>
    %c0_10 = arith.constant 0 : index
    %c0_11 = arith.constant 0 : index
    %27 = vector.load %arg4[%c0_10, %c0_11] : memref<32x128xbf16, #tpu.memory_space<vmem>>, vector<32x128xbf16>
    %cst_12 = arith.constant dense<0.000000e+00> : vector<5x128xf32>
    %28 = tpu.matmul %26, %27, %cst_12 {dimension_numbers = #tpu.dot_dimension_numbers<[1], [0], [0], [1], [0, 0, 1, 1], [], []>} : vector<5x32xbf16>, vector<32x128xbf16>, vector<5x128xf32> -> vector<5x128xf32>
    %c0_13 = arith.constant 0 : index
    %c0_14 = arith.constant 0 : index
    %29 = vector.load %arg5[%c0_13, %c0_14] : memref<1x128xf32, #tpu.memory_space<vmem>>, vector<1x128xf32>
    %30 = vector.broadcast %29 : vector<1x128xf32> to vector<5x128xf32>
    %31 = arith.addf %28, %30 : vector<5x128xf32>
    %32 = vector.extract_strided_slice %31 {offsets = [0, 0], sizes = [5, 64], strides = [1, 1]} : vector<5x128xf32> to vector<5x64xf32>
    %33 = vector.extract_strided_slice %31 {offsets = [0, 64], sizes = [5, 64], strides = [1, 1]} : vector<5x128xf32> to vector<5x64xf32>
    %34 = arith.negf %32 : vector<5x64xf32>
    %35 = math.exp %34 : vector<5x64xf32>
    %cst_15 = arith.constant 1.000000e+00 : f32
    %36 = vector.broadcast %cst_15 : f32 to vector<5x64xf32>
    %37 = arith.addf %36, %35 : vector<5x64xf32>
    %38 = arith.divf %36, %37 : vector<5x64xf32>
    %39 = arith.mulf %32, %38 : vector<5x64xf32>
    %40 = arith.mulf %39, %33 : vector<5x64xf32>
    %c0_16 = arith.constant 0 : index
    %c0_17 = arith.constant 0 : index
    %41 = vector.load %arg6[%c0_16, %c0_17] : memref<1x64xf32, #tpu.memory_space<vmem>>, vector<1x64xf32>
    %c0_18 = arith.constant 0 : index
    %c0_19 = arith.constant 0 : index
    %42 = vector.load %arg7[%c0_18, %c0_19] : memref<1x64xf32, #tpu.memory_space<vmem>>, vector<1x64xf32>
    %cst_20 = arith.constant dense<0.000000e+00> : vector<5xf32>
    %43 = vector.multi_reduction <add>, %40, %cst_20 [1] : vector<5x64xf32> to vector<5xf32>
    %44 = vector.shape_cast %43 : vector<5xf32> to vector<5x1xf32>
    %cst_21 = arith.constant 6.400000e+01 : f32
    %45 = vector.broadcast %cst_21 : f32 to vector<5x1xf32>
    %46 = arith.divf %44, %45 : vector<5x1xf32>
    %47 = vector.broadcast %46 : vector<5x1xf32> to vector<5x64xf32>
    %48 = arith.subf %40, %47 : vector<5x64xf32>
    %49 = arith.mulf %48, %48 : vector<5x64xf32>
    %cst_22 = arith.constant dense<0.000000e+00> : vector<5xf32>
    %50 = vector.multi_reduction <add>, %49, %cst_22 [1] : vector<5x64xf32> to vector<5xf32>
    %51 = vector.shape_cast %50 : vector<5xf32> to vector<5x1xf32>
    %cst_23 = arith.constant 6.400000e+01 : f32
    %52 = vector.broadcast %cst_23 : f32 to vector<5x1xf32>
    %53 = arith.divf %51, %52 : vector<5x1xf32>
    %54 = vector.broadcast %46 : vector<5x1xf32> to vector<5x64xf32>
    %55 = arith.subf %40, %54 : vector<5x64xf32>
    %cst_24 = arith.constant 9.99999997E-7 : f32
    %56 = vector.broadcast %cst_24 : f32 to vector<5x1xf32>
    %57 = arith.addf %53, %56 : vector<5x1xf32>
    %58 = math.rsqrt %57 : vector<5x1xf32>
    %59 = vector.broadcast %58 : vector<5x1xf32> to vector<5x64xf32>
    %60 = arith.mulf %55, %59 : vector<5x64xf32>
    %61 = vector.broadcast %41 : vector<1x64xf32> to vector<5x64xf32>
    %62 = arith.mulf %60, %61 : vector<5x64xf32>
    %63 = vector.broadcast %42 : vector<1x64xf32> to vector<5x64xf32>
    %64 = arith.addf %62, %63 : vector<5x64xf32>
    %65 = arith.truncf %64 : vector<5x64xf32> to vector<5x64xbf16>
    %c0_25 = arith.constant 0 : index
    %c0_26 = arith.constant 0 : index
    %66 = vector.load %arg8[%c0_25, %c0_26] : memref<64x32xbf16, #tpu.memory_space<vmem>>, vector<64x32xbf16>
    %cst_27 = arith.constant dense<0.000000e+00> : vector<5x32xf32>
    %67 = tpu.matmul %65, %66, %cst_27 {dimension_numbers = #tpu.dot_dimension_numbers<[1], [0], [0], [1], [0, 0, 1, 1], [], []>} : vector<5x64xbf16>, vector<64x32xbf16>, vector<5x32xf32> -> vector<5x32xf32>
    %c0_28 = arith.constant 0 : index
    %c0_29 = arith.constant 0 : index
    %68 = vector.load %arg9[%c0_28, %c0_29] : memref<1x32xf32, #tpu.memory_space<vmem>>, vector<1x32xf32>
    %69 = vector.broadcast %68 : vector<1x32xf32> to vector<5x32xf32>
    %70 = arith.addf %67, %69 : vector<5x32xf32>
    %71 = arith.addf %1, %70 : vector<5x32xf32>
    %c0_30 = arith.constant 0 : index
    %c0_31 = arith.constant 0 : index
    %c0_32 = arith.constant 0 : index
    %72 = vector.load %arg10[%c0_30, %c0_31, %c0_32] : memref<1x5x32xf32, #tpu.memory_space<vmem>>, vector<1x5x32xf32>
    %73 = vector.shape_cast %72 : vector<1x5x32xf32> to vector<5x32xf32>
    %74 = vector.shape_cast %71 : vector<5x32xf32> to vector<1x5x32xf32>
    tpu.vector_store %arg10[%c0_30, %c0_31, %c0_32], %74 {strides = array<i32>} : memref<1x5x32xf32, #tpu.memory_space<vmem>>, vector<1x5x32xf32>,
    return
  }
  func.func @transform_0(%arg0: i32) -> (i32, i32, i32) {
    %c0_i32 = arith.constant 0 : i32
    %c0_i32_0 = arith.constant 0 : i32
    %c0_i32_1 = arith.constant 0 : i32
    return %arg0, %c0_i32, %c0_i32_0 : i32, i32, i32
  }
  func.func @transform_1(%arg0: i32) -> (i32, i32) {
    %c0_i32 = arith.constant 0 : i32
    %c0_i32_0 = arith.constant 0 : i32
    %c0_i32_1 = arith.constant 0 : i32
    return %c0_i32, %c0_i32_0 : i32, i32
  }
  func.func @transform_2(%arg0: i32) -> (i32, i32) {
    %c0_i32 = arith.constant 0 : i32
    %c0_i32_0 = arith.constant 0 : i32
    %c0_i32_1 = arith.constant 0 : i32
    return %c0_i32, %c0_i32_0 : i32, i32
  }
  func.func @transform_3(%arg0: i32) -> (i32, i32) {
    %c0_i32 = arith.constant 0 : i32
    %c0_i32_0 = arith.constant 0 : i32
    %c0_i32_1 = arith.constant 0 : i32
    return %c0_i32, %c0_i32_0 : i32, i32
  }
  func.func @transform_4(%arg0: i32) -> (i32, i32) {
    %c0_i32 = arith.constant 0 : i32
    %c0_i32_0 = arith.constant 0 : i32
    %c0_i32_1 = arith.constant 0 : i32
    return %c0_i32, %c0_i32_0 : i32, i32
  }
  func.func @transform_5(%arg0: i32) -> (i32, i32) {
    %c0_i32 = arith.constant 0 : i32
    %c0_i32_0 = arith.constant 0 : i32
    %c0_i32_1 = arith.constant 0 : i32
    return %c0_i32, %c0_i32_0 : i32, i32
  }
  func.func @transform_6(%arg0: i32) -> (i32, i32) {
    %c0_i32 = arith.constant 0 : i32
    %c0_i32_0 = arith.constant 0 : i32
    %c0_i32_1 = arith.constant 0 : i32
    return %c0_i32, %c0_i32_0 : i32, i32
  }
  func.func @transform_7(%arg0: i32) -> (i32, i32) {
    %c0_i32 = arith.constant 0 : i32
    %c0_i32_0 = arith.constant 0 : i32
    %c0_i32_1 = arith.constant 0 : i32
    return %c0_i32, %c0_i32_0 : i32, i32
  }
  func.func @transform_8(%arg0: i32) -> (i32, i32) {
    %c0_i32 = arith.constant 0 : i32
    %c0_i32_0 = arith.constant 0 : i32
    %c0_i32_1 = arith.constant 0 : i32
    return %c0_i32, %c0_i32_0 : i32, i32
  }
  func.func @transform_9(%arg0: i32) -> (i32, i32, i32) {
    %c0_i32 = arith.constant 0 : i32
    %c0_i32_0 = arith.constant 0 : i32
    %c0_i32_1 = arith.constant 0 : i32
    return %arg0, %c0_i32, %c0_i32_0 : i32, i32, i32
  }
}

module attributes {stable_mosaic.version = 11 : i64} {
  func.func @_final_norm_pool_kernel(%arg0: i32, %arg1: memref<2x5x32xf32, #tpu.memory_space<vmem>>, %arg2: memref<1x32xf32, #tpu.memory_space<vmem>>, %arg3: memref<1x32xf32, #tpu.memory_space<vmem>>, %arg4: memref<2x32xf32, #tpu.memory_space<vmem>>) attributes {dimension_semantics = [#tpu.dimension_semantics<arbitrary>], iteration_bounds = array<i64: 1>, scalar_prefetch = 0 : i64, scratch_operands = 0 : i64, tpu.core_type = #tpu.core_type<tc>, window_params = [{pipeline_mode = #tpu.pipeline_mode<synchronous>, transform_indices = @transform_0, window_bounds = array<i64: 2, 5, 32>}, {pipeline_mode = #tpu.pipeline_mode<synchronous>, transform_indices = @transform_1, window_bounds = array<i64: 1, 32>}, {pipeline_mode = #tpu.pipeline_mode<synchronous>, transform_indices = @transform_2, window_bounds = array<i64: 1, 32>}, {pipeline_mode = #tpu.pipeline_mode<synchronous>, transform_indices = @transform_3, window_bounds = array<i64: 2, 32>}]} {
    %c0 = arith.constant 0 : index
    %c0_0 = arith.constant 0 : index
    %c0_1 = arith.constant 0 : index
    %0 = vector.load %arg1[%c0, %c0_0, %c0_1] : memref<2x5x32xf32, #tpu.memory_space<vmem>>, vector<2x5x32xf32>
    %c0_2 = arith.constant 0 : index
    %c0_3 = arith.constant 0 : index
    %1 = vector.load %arg2[%c0_2, %c0_3] : memref<1x32xf32, #tpu.memory_space<vmem>>, vector<1x32xf32>
    %c0_4 = arith.constant 0 : index
    %c0_5 = arith.constant 0 : index
    %2 = vector.load %arg3[%c0_4, %c0_5] : memref<1x32xf32, #tpu.memory_space<vmem>>, vector<1x32xf32>
    %cst = arith.constant dense<0.000000e+00> : vector<2x5xf32>
    %3 = vector.multi_reduction <add>, %0, %cst [2] : vector<2x5x32xf32> to vector<2x5xf32>
    %4 = vector.shape_cast %3 : vector<2x5xf32> to vector<2x5x1xf32>
    %cst_6 = arith.constant 3.200000e+01 : f32
    %5 = vector.broadcast %cst_6 : f32 to vector<2x5x1xf32>
    %6 = arith.divf %4, %5 : vector<2x5x1xf32>
    %7 = vector.broadcast %6 : vector<2x5x1xf32> to vector<2x5x32xf32>
    %8 = arith.subf %0, %7 : vector<2x5x32xf32>
    %9 = arith.mulf %8, %8 : vector<2x5x32xf32>
    %cst_7 = arith.constant dense<0.000000e+00> : vector<2x5xf32>
    %10 = vector.multi_reduction <add>, %9, %cst_7 [2] : vector<2x5x32xf32> to vector<2x5xf32>
    %11 = vector.shape_cast %10 : vector<2x5xf32> to vector<2x5x1xf32>
    %cst_8 = arith.constant 3.200000e+01 : f32
    %12 = vector.broadcast %cst_8 : f32 to vector<2x5x1xf32>
    %13 = arith.divf %11, %12 : vector<2x5x1xf32>
    %14 = vector.broadcast %6 : vector<2x5x1xf32> to vector<2x5x32xf32>
    %15 = arith.subf %0, %14 : vector<2x5x32xf32>
    %cst_9 = arith.constant 9.99999997E-7 : f32
    %16 = vector.broadcast %cst_9 : f32 to vector<2x5x1xf32>
    %17 = arith.addf %13, %16 : vector<2x5x1xf32>
    %18 = math.rsqrt %17 : vector<2x5x1xf32>
    %19 = vector.broadcast %18 : vector<2x5x1xf32> to vector<2x5x32xf32>
    %20 = arith.mulf %15, %19 : vector<2x5x32xf32>
    %21 = vector.shape_cast %1 : vector<1x32xf32> to vector<1x1x32xf32>
    %22 = vector.broadcast %21 : vector<1x1x32xf32> to vector<2x5x32xf32>
    %23 = arith.mulf %20, %22 : vector<2x5x32xf32>
    %24 = vector.shape_cast %2 : vector<1x32xf32> to vector<1x1x32xf32>
    %25 = vector.broadcast %24 : vector<1x1x32xf32> to vector<2x5x32xf32>
    %26 = arith.addf %23, %25 : vector<2x5x32xf32>
    %27 = tpu.iota {dimensions = array<i32: 0>} : vector<5x1xi32>
    %c0_i32 = arith.constant 0 : i32
    %28 = vector.broadcast %c0_i32 : i32 to vector<5x1xi32>
    %29 = arith.cmpi sgt, %27, %28 : vector<5x1xi32>
    %30 = arith.extui %29 : vector<5x1xi1> to vector<5x1xi32>
    %31 = arith.sitofp %30 : vector<5x1xi32> to vector<5x1xf32>
    %32 = vector.shape_cast %31 : vector<5x1xf32> to vector<1x5x1xf32>
    %33 = vector.broadcast %32 : vector<1x5x1xf32> to vector<2x5x32xf32>
    %34 = arith.mulf %26, %33 : vector<2x5x32xf32>
    %cst_10 = arith.constant dense<0.000000e+00> : vector<2x32xf32>
    %35 = vector.multi_reduction <add>, %34, %cst_10 [1] : vector<2x5x32xf32> to vector<2x32xf32>
    %cst_11 = arith.constant 4.000000e+00 : f32
    %36 = vector.broadcast %cst_11 : f32 to vector<2x32xf32>
    %37 = arith.divf %35, %36 : vector<2x32xf32>
    %c0_12 = arith.constant 0 : index
    %c0_13 = arith.constant 0 : index
    %38 = vector.load %arg4[%c0_12, %c0_13] : memref<2x32xf32, #tpu.memory_space<vmem>>, vector<2x32xf32>
    tpu.vector_store %arg4[%c0_12, %c0_13], %37 {strides = array<i32>} : memref<2x32xf32, #tpu.memory_space<vmem>>, vector<2x32xf32>,
    return
  }
  func.func @transform_0(%arg0: i32) -> (i32, i32, i32) {
    %c0_i32 = arith.constant 0 : i32
    %c0_i32_0 = arith.constant 0 : i32
    %c0_i32_1 = arith.constant 0 : i32
    %c0_i32_2 = arith.constant 0 : i32
    return %c0_i32, %c0_i32_0, %c0_i32_1 : i32, i32, i32
  }
  func.func @transform_1(%arg0: i32) -> (i32, i32) {
    %c0_i32 = arith.constant 0 : i32
    %c0_i32_0 = arith.constant 0 : i32
    %c0_i32_1 = arith.constant 0 : i32
    return %c0_i32, %c0_i32_0 : i32, i32
  }
  func.func @transform_2(%arg0: i32) -> (i32, i32) {
    %c0_i32 = arith.constant 0 : i32
    %c0_i32_0 = arith.constant 0 : i32
    %c0_i32_1 = arith.constant 0 : i32
    return %c0_i32, %c0_i32_0 : i32, i32
  }
  func.func @transform_3(%arg0: i32) -> (i32, i32) {
    %c0_i32 = arith.constant 0 : i32
    %c0_i32_0 = arith.constant 0 : i32
    %c0_i32_1 = arith.constant 0 : i32
    return %c0_i32, %c0_i32_0 : i32, i32
  }
}

</mosaic_0001>

<bundles_post_ra>
// kernel: eva02_forward.11
= control target key start
LH: loop header
LB: loop body
LE: loop exit
PB: predicated region body
PF: predicated region fallthrough
CT: control target
= control target key end

     0   :  { %vm19_vm0 = vcmask 258048   ;;  %s220_s0 = inlined_call_operand.vmem [shape: f32[2,5,32], index: 0, kind: input, shape index: {}]   ;;  %s221_s1 = inlined_call_operand.vmem [shape: f32[1,32], index: 1, kind: input, shape index: {}]   ;;  %s222_s2 = inlined_call_operand.vmem [shape: f32[1,32], index: 2, kind: input, shape index: {}]   ;;  %s223_s3 = inlined_call_operand.hbm [shape: f32[2,32], index: 3, kind: output, shape index: {}]  }
   0x1   :  { %v15_v0 = vld [vmem:[%s220_s0] sm:$0x1f] }
   0x2   :  { %v20_v1 = vsel %vm19_vm0, %v15_v0, 0.0 }
   0x3   :  { %21 = vadd.xlane.f32.xlu0 %v20_v1 }
   0x4   :  { %8 = vsyncpa [#allocation3], 0  ;;  %v16_v2 = vld [vmem:[%s220_s0 + $0x8] sm:$0x1f]  ;;  %v175_v4 = vmov 32.0   ;;  %v81_v30 = vlaneseq  ;;  %v176_v43 = vmov 4.0  }
   0x5   :  { %v23_v3 = vsel %vm19_vm0, %v16_v2, 0.0  ;;  %141 = vrcp.f32 %v175_v4  ;;  %v139_v37 = vld [vmem:[%s221_s1] ss:$0 sm:$0xff]  ;;  %v177_v45 = vmov 0.0   ;;  %s178_s1 = smov [#allocation2]   ;;  %s125_s21 = sshll.u32 %s223_s3, 4  ;;  %s126_s21 = int_to_ptr.hbm [resolvable:$true] %s125_s21 }
   0x6   :  { %v82_v34 = vshrl.u32 %v81_v30, 7  ;;  %v140_v40 = vld [vmem:[%s222_s2] ss:$0 sm:$0xff]  ;;  %s123_s2 = sshll.u32 %s178_s1, 4  ;;  %vm113_vm10 = vcmask 1041409   ;;  %vm116_vm11 = vcmask 254976   ;;  %s124_s2 = int_to_ptr.vmem [resolvable:$true] %s123_s2 }
   0x8   :  { %vm83_vm5 = vcmp.gt.s32.totalorder %v82_v34, 0 }
   0x9   :  { %v134_v46 = vsel %vm83_vm5, 1.0, %v177_v45 }
   0xb   :  { %24 = vadd.xlane.f32.xlu0 %v23_v3  ;;  %v142_v5 = vpop.eup %141 }
   0xc   :  { %v27_v6 = vmul.f32 32.0, %v142_v5  ;;  %vm31_vm1 = vweird.f32 %v142_v5 }
   0xe   :  { %v28_v7 = vsub.f32 1.0, %v27_v6 }
  0x10   :  { %v29_v8 = vmul.f32 %v142_v5, %v28_v7 }
  0x12   :  { %v30_v9 = vadd.f32 %v142_v5, %v29_v8 }
  0x14   :  { %v32_v10 = vsel %vm31_vm1, %v142_v5, %v30_v9 }
  0x76   :  { %v22_v11 = vpop.xlane.xlu0 %21 }
  0x77   :  { %v33_v12 = vmul.f32 %v32_v10, %v22_v11 }
  0x79   :  { %v35_v13 = vsub.f32 %v15_v0, %v33_v12 }
  0x7b   :  { %v37_v14 = vmul.f32 %v35_v13, %v35_v13 }
  0x7d   :  { %v39_v15 = vsel %vm19_vm0, %v37_v14, 0.0 }
  0x7e   :  { %40 = vadd.xlane.f32.xlu1 %v39_v15  ;;  %v25_v16 = vpop.xlane.xlu0 %24 }
  0x7f   :  { %v34_v17 = vmul.f32 %v32_v10, %v25_v16 }
  0x81   :  { %v36_v18 = vsub.f32 %v16_v2, %v34_v17 }
  0x83   :  { %v38_v19 = vmul.f32 %v36_v18, %v36_v18 }
  0x85   :  { %v42_v20 = vsel %vm19_vm0, %v38_v19, 0.0 }
  0x86   :  { %43 = vadd.xlane.f32.xlu1 %v42_v20 }
  0xf1   :  { %v41_v21 = vpop.xlane.xlu1 %40 }
  0xf2   :  { %v45_v22 = vmul.f32 %v41_v21, %v32_v10 }
  0xf4   :  { %v47_v23 = vadd.f32 1e-06, %v45_v22 }
  0xf6   :  { %143 = vrsqrt.f32 %v47_v23  ;;  %vm55_vm3 = vweird.f32 %v47_v23 }
  0xf9   :  { %v44_v24 = vpop.xlane.xlu1 %43 }
  0xfa   :  { %v46_v25 = vmul.f32 %v44_v24, %v32_v10 }
  0xfc   :  { %v144_v26 = vpop.eup %143  ;;  %v48_v27 = vadd.f32 1e-06, %v46_v25 }
  0xfd   :  { %v50_v28 = vmul.f32 %v144_v26, %v47_v23  ;;  %vm56_vm2 = vweird.f32 %v144_v26 }
  0xfe   :  { %145 = vrsqrt.f32 %v48_v27  ;;  %vm57_vm4 = vmor %vm55_vm3, %vm56_vm2  ;;  %vm65_vm7 = vweird.f32 %v48_v27 }
  0xff   :  { %v51_v29 = vmul.f32 %v144_v26, %v50_v28  ;;  %147 = vrcp.f32 %v176_v43 }
 0x101   :  { %v52_v31 = vmul.f32 0.5, %v51_v29 }
 0x103   :  { %v53_v32 = vsub.f32 1.5, %v52_v31 }
 0x104   :  { %v146_v33 = vpop.eup %145 }
 0x105   :  { %v54_v35 = vmul.f32 %v144_v26, %v53_v32  ;;  %v60_v36 = vmul.f32 %v146_v33, %v48_v27  ;;  %vm66_vm6 = vweird.f32 %v146_v33  ;;  %v148_v51 = vpop.eup %147 }
 0x106   :  { %vm67_vm8 = vmor %vm65_vm7, %vm66_vm6  ;;  %v103_v57 = vmul.f32 4.0, %v148_v51  ;;  %vm107_vm9 = vweird.f32 %v148_v51 }
 0x107   :  { %v58_v38 = vsel %vm57_vm4, %v144_v26, %v54_v35  ;;  %v61_v39 = vmul.f32 %v146_v33, %v60_v36 }
 0x108   :  { %v69_v41 = vmul.f32 %v58_v38, %v35_v13  ;;  %v104_v62 = vsub.f32 1.0, %v103_v57 }
 0x109   :  { %v62_v42 = vmul.f32 0.5, %v61_v39 }
 0x10a   :  { %v74_v44 = vmul.f32 %v139_v37, %v69_v41  ;;  %v105_v2 = vmul.f32 %v148_v51, %v104_v62 }
 0x10b   :  { %v63_v47 = vsub.f32 1.5, %v62_v42 }
 0x10c   :  { %v79_v48 = vadd.f32 %v140_v40, %v74_v44  ;;  %v106_v6 = vadd.f32 %v148_v51, %v105_v2 }
 0x10d   :  { %v64_v49 = vmul.f32 %v146_v33, %v63_v47 }
 0x10e   :  { %v86_v50 = vmul.f32 %v134_v46, %v79_v48  ;;  %v108_v10 = vsel %vm107_vm9, %v148_v51, %v106_v6 }
 0x10f   :  { %v68_v52 = vsel %vm67_vm8, %v146_v33, %v64_v49 }
 0x110   :  { %v70_v53 = vmul.f32 %v68_v52, %v36_v18  ;;  %v88_v54 = vsel %vm19_vm0, %v86_v50, 0.0 }
 0x111   :  { %v89_v55 = vrot.slane %v88_v54, 4 }
 0x112   :  { %v75_v56 = vmul.f32 %v139_v37, %v70_v53 }
 0x113   :  { %v90_v58 = vadd.f32 %v89_v55, %v88_v54 }
 0x114   :  { %v80_v59 = vadd.f32 %v140_v40, %v75_v56 }
 0x115   :  { %v91_v60 = vrot.slane %v90_v58, 2 }
 0x116   :  { %v87_v61 = vmul.f32 %v134_v46, %v80_v59 }
 0x117   :  { %v92_v0 = vadd.f32 %v91_v60, %v90_v58 }
 0x118   :  { %v95_v63 = vsel %vm19_vm0, %v87_v61, 0.0 }
 0x119   :  { %v96_v1 = vrot.slane %v95_v63, 4  ;;  %v93_v4 = vrot.slane %v92_v0, 1 }
 0x11b   :  { %v97_v3 = vadd.f32 %v96_v1, %v95_v63  ;;  %v94_v8 = vadd.f32 %v93_v4, %v92_v0 }
 0x11d   :  { %v98_v5 = vrot.slane %v97_v3, 2  ;;  %v109_v12 = vmul.f32 %v108_v10, %v94_v8 }
 0x11f   :  { %v99_v7 = vadd.f32 %v98_v5, %v97_v3 }
 0x121   :  { %v100_v9 = vrot.slane %v99_v7, 1 }
 0x123   :  { %v101_v11 = vadd.f32 %v100_v9, %v99_v7 }
 0x125   :  { %v110_v13 = vmul.f32 %v108_v10, %v101_v11 }
 0x127   :  { %v114_v14 = vsel %vm113_vm10, %v110_v13, %v109_v12 }
 0x128   :  { %117 = vst.msk [vmem:[#allocation2] sm:$0x3] %vm116_vm11, %v114_v14 }
 0x129   :  { %128 = dma.vmem_to_hbm [thread:$0]  %s124_s2, 32, %s126_s21, [#allocation3]  }
 0x12a   :  { %173 = dma.done.wait [#allocation3], 32  }
 0x12b   :  { %174 = vsyncadd [#allocation3], 4294967264 }
 0x12c   :  { %133 = vsyncpa [#allocation3], 1 }

// kernel: eva02_forward.6
= control target key start
LH: loop header
LB: loop body
LE: loop exit
PB: predicated region body
PF: predicated region fallthrough
CT: control target
= control target key end

     0   :  { %vm119_vm0 = vcmask 523264   ;;  %vm149_vm1 = vcmask 261120   ;;  %s285_s1 = inlined_call_operand.vmem [shape: bf16[192,32], index: 1, kind: input, shape index: {}]   ;;  %s286_s0 = inlined_call_operand.vmem [shape: f32[8,192], index: 0, kind: input, shape index: {}]   ;;  %s287_s2 = inlined_call_operand.vmem [shape: f32[1,32], index: 2, kind: input, shape index: {}]   ;;  %s288_s3 = inlined_call_operand.vmem [shape: f32[8,32], index: 3, kind: output, shape index: {}]  }
   0x1   :  { %v211_v0 = vld [vmem:[%s285_s1 + $0x38] sm:$0xff]  ;;  %v210_v2 = vld [vmem:[%s285_s1 + $0x30] sm:$0xff]  ;;  %v209_v4 = vld [vmem:[%s285_s1 + $0x28] sm:$0xff] }
   0x2   :  { %v215_v1 = vld [vmem:[%s285_s1 + $0x58] sm:$0xff]  ;;  %123 = vmatpush.bf16.msra.mxu0 %v211_v0  ;;  %v214_v3 = vld [vmem:[%s285_s1 + $0x50] sm:$0xff]  ;;  %v213_v5 = vld [vmem:[%s285_s1 + $0x48] sm:$0xff] }
   0x3   :  { %140 = vmatpush.bf16.msra.mxu1 %v215_v1  ;;  %v208_v6 = vld [vmem:[%s285_s1 + $0x20] sm:$0xff]  ;;  %v16_v8 = vld [vmem:[%s286_s0 + $0x8] sm:$0xff]  ;;  %v207_v9 = vld [vmem:[%s285_s1 + $0x18] sm:$0xff] }
   0x4   :  { %v212_v7 = vld [vmem:[%s285_s1 + $0x40] sm:$0xff]  ;;  %v18_v10 = vpack.c.bf16 %v16_v8, %v16_v8  ;;  %v206_v11 = vld [vmem:[%s285_s1 + $0x10] sm:$0xff]  ;;  %v205_v12 = vld [vmem:[%s285_s1 + $0x8] sm:$0xff] }
   0x5   :  { %v204_v13 = vld [vmem:[%s285_s1] sm:$0xff] }
   0x6   :  { %124 = vmatpush.bf16.msra.mxu0 %v210_v2  ;;  %v15_v14 = vld [vmem:[%s286_s0] sm:$0xff] }
   0x7   :  { %141 = vmatpush.bf16.msra.mxu1 %v214_v3  ;;  %v17_v15 = vpack.c.bf16 %v15_v14, %v15_v14  ;;  %v216_v18 = vld [vmem:[%s287_s2] ss:$0 sm:$0xff] }
   0xa   :  { %125 = vmatpush.bf16.msra.mxu0 %v209_v4 }
   0xb   :  { %142 = vmatpush.bf16.msra.mxu1 %v213_v5 }
   0xe   :  { %126 = vmatpush.bf16.msra.mxu0 %v208_v6 }
   0xf   :  { %143 = vmatpush.bf16.msra.mxu1 %v212_v7 }
  0x12   :  { %127 = vmatpush.bf16.msra.mxu0 %v207_v9  ;;  %203 = vmatmul.msk.bf16.vlgmr.msra.gmra.mxu1 %vm119_vm0, %v18_v10 }
  0x16   :  { %128 = vmatpush.bf16.msra.mxu0 %v206_v11 }
  0x1a   :  { %129 = vmatpush.bf16.msra.mxu0 %v205_v12 }
  0x1e   :  { %130 = vmatpush.bf16.msra.mxu0 %v204_v13 }
  0x21   :  { %131 = vmatmul.bf16.vlgmr.msra.gmra.mxu0 %v17_v15 }
  0x8f   :  { %v145_v16 = vpop.f32.mrf.mxu1 }
  0x97   :  { %v147_v17 = vpop.f32.mrf.mxu1 }
  0x9e   :  { %v132_v19 = vpop.f32.mrf.mxu0 }
  0x9f   :  { %v133_v20 = vadd.f32 %v216_v18, %v132_v19 }
  0xa1   :  { %v146_v21 = vadd.f32 %v145_v16, %v133_v20 }
  0xa3   :  { %150 = vst.msk [vmem:[%s288_s3] sm:$0xff] %vm149_vm1, %v146_v21 }
  0xa6   :  { %v134_v22 = vpop.f32.mrf.mxu0 }

// kernel: eva02_forward.8
= control target key start
LH: loop header
LB: loop body
LE: loop exit
PB: predicated region body
PF: predicated region fallthrough
CT: control target
= control target key end

     0   :  { %s714_s30 = smov 0   ;;  %s784_s0 = inlined_call_operand.vmem [shape: f32[2,5,32], index: 0, kind: input, shape index: {}]   ;;  %s785_s1 = inlined_call_operand.vmem [shape: f32[1,32], index: 1, kind: input, shape index: {}]   ;;  %s786_s2 = inlined_call_operand.vmem [shape: f32[1,32], index: 2, kind: input, shape index: {}]   ;;  %s787_s3 = inlined_call_operand.vmem [shape: bf16[32,128], index: 3, kind: input, shape index: {}]   ;;  %s788_s4 = inlined_call_operand.vmem [shape: f32[1,128], index: 4, kind: input, shape index: {}]   ;;  %s789_s5 = inlined_call_operand.vmem [shape: f32[1,64], index: 5, kind: input, shape index: {}]   ;;  %s790_s6 = inlined_call_operand.vmem [shape: f32[1,64], index: 6, kind: input, shape index: {}]   ;;  %s791_s7 = inlined_call_operand.vmem [shape: bf16[64,32], index: 7, kind: input, shape index: {}]   ;;  %s792_s8 = inlined_call_operand.vmem [shape: f32[1,32], index: 8, kind: input, shape index: {}]   ;;  %s793_s9 = inlined_call_operand.vmem [shape: f32[2,5,32], index: 9, kind: output, shape index: {}]  }
   0x1 LB: > { %s582_s10 = sadd.s32 4294967295, %s659_s30   ;;  %p586_p0 = scmp.ge.s32.totalorder %s659_s30, 1  ;;  %s659_s30 = sphi %s714_s30, %s19_s30  }
   0x2   : > { %p286_p1 = scmp.lt.s32.totalorder %s659_s30, 3 }
   0x4   : > { %p287_p2 = pnand %p586_p0, %p286_p1 }
   0x5   : > { %p320_p3 = scmp.lt.s32.totalorder (!%p287_p2), %s582_s10, 1  ;;  %s662_s25 = smov (!%p287_p2), 64  }
   0x6   : > { %290 = sbr.rel (%p287_p2) target bundleno = 934 (0x3a6), region = 56 }
   0xb   : > { %s795_s10 = smov (!%p320_p3, %s582_s10), 1  ;;  %vm332_vm0 = vcmask 258048   ;;  %v661_v2 = vmov 32.0   ;;  %v619_v14 = vld [vmem:[%s787_s3 + $0x8] sm:$0xff]  ;;  %v618_v15 = vld [vmem:[%s787_s3] sm:$0xff]  ;;  %vm391_vm5 = vcmask 261120  }
   0xc   : > { %s587_s11 = sshll.u32 %s795_s10, 3  ;;  %641 = vrcp.f32 %v661_v2  ;;  %401 = vmatpush.bf16.msra.mxu0 %v619_v14  ;;  %v635_v25 = vld [vmem:[%s785_s1] ss:$0 sm:$0xff]  ;;  %vm435_vm10 = vcmask 520192   ;;  %v663_v53 = vmov 64.0   ;;  %v623_v2 = vld [vmem:[%s791_s7 + $0x18] sm:$0xff] }
   0xd   : > { %s323_s14 = scalar_lea.vmem %s784_s0, %s587_s11  ;;  %v636_v28 = vld [vmem:[%s786_s2] ss:$0 sm:$0xff]  ;;  %518 = vmatpush.bf16.msra.mxu1 %v623_v2  ;;  %vm510_vm15 = vcmask 523264   ;;  %s327_s24 = scalar_lea.vmem %s793_s9, %s587_s11 }
   0xe   : > { %v730_v0 = vld [vmem:[%s323_s14] sm:$0x1f] }
   0xf   : > { %v333_v1 = vsel %vm332_vm0, %v730_v0, 0.0  ;;  %v637_v32 = vld [vmem:[%s788_s4] ss:$0 sm:$0xff] }
  0x10   : > { %334 = vadd.xlane.f32.xlu0 %v333_v1  ;;  %402 = vmatpush.bf16.msra.mxu0 %v618_v15  ;;  %v638_v15 = vld [vmem:[%s789_s5] ss:$0 sm:$0xff] }
  0x12   : > { %v642_v3 = vpop.eup %641 }
  0x13   : > { %v337_v4 = vmul.f32 32.0, %v642_v3  ;;  %vm341_vm1 = vweird.f32 %v642_v3 }
  0x15   : > { %v338_v5 = vsub.f32 1.0, %v337_v4  ;;  %v621_v4 = vld [vmem:[%s791_s7 + $0x8] sm:$0xff] }
  0x17   : > { %v339_v6 = vmul.f32 %v642_v3, %v338_v5  ;;  %v620_v5 = vld [vmem:[%s791_s7] sm:$0xff] }
  0x19   : > { %v340_v7 = vadd.f32 %v642_v3, %v339_v6 }
  0x1b   : > { %v342_v8 = vsel %vm341_vm1, %v642_v3, %v340_v7  ;;  %v622_v3 = vld [vmem:[%s791_s7 + $0x10] sm:$0xff] }
  0x1c   : > { %519 = vmatpush.bf16.msra.mxu1 %v622_v3 }
  0x20   : > { %520 = vmatpush.bf16.msra.mxu1 %v621_v4 }
  0x24   : > { %521 = vmatpush.bf16.msra.mxu1 %v620_v5 }
  0x83   : > { %v335_v9 = vpop.xlane.xlu0 %334 }
  0x84   : > { %v343_v10 = vmul.f32 %v342_v8, %v335_v9 }
  0x86   : > { %v344_v11 = vsub.f32 %v730_v0, %v343_v10 }
  0x88   : > { %v345_v12 = vmul.f32 %v344_v11, %v344_v11 }
  0x8a   : > { %v346_v13 = vsel %vm332_vm0, %v345_v12, 0.0 }
  0x8b   : > { %347 = vadd.xlane.f32.xlu0 %v346_v13 }
  0xfe   : > { %v348_v16 = vpop.xlane.xlu0 %347 }
  0xff   : > { %v349_v17 = vmul.f32 %v348_v16, %v342_v8 }
 0x101   : > { %v350_v18 = vadd.f32 1e-06, %v349_v17 }
 0x103   : > { %643 = vrsqrt.f32 %v350_v18  ;;  %vm357_vm3 = vweird.f32 %v350_v18 }
 0x109   : > { %v644_v19 = vpop.eup %643 }
 0x10a   : > { %v352_v20 = vmul.f32 %v644_v19, %v350_v18  ;;  %vm358_vm2 = vweird.f32 %v644_v19  ;;  %v639_v18 = vld [vmem:[%s790_s6] ss:$0 sm:$0xff] }
 0x10b   : > { %vm359_vm4 = vmor %vm357_vm3, %vm358_vm2 }
 0x10c   : > { %v353_v21 = vmul.f32 %v644_v19, %v352_v20 }
 0x10e   : > { %v354_v22 = vmul.f32 0.5, %v353_v21 }
 0x110   : > { %v355_v23 = vsub.f32 1.5, %v354_v22  ;;  %v640_v22 = vld [vmem:[%s792_s8] ss:$0 sm:$0xff] }
 0x112   : > { %v356_v24 = vmul.f32 %v644_v19, %v355_v23 }
 0x114   : > { %v360_v26 = vsel %vm359_vm4, %v644_v19, %v356_v24 }
 0x115   : > { %v361_v27 = vmul.f32 %v360_v26, %v344_v11 }
 0x117   : > { %v365_v29 = vmul.f32 %v635_v25, %v361_v27 }
 0x119   : > { %v369_v30 = vadd.f32 %v636_v28, %v365_v29 }
 0x11b   : > { %v370_v31 = vpack.c.bf16 %v369_v30, %v369_v30 }
 0x11d   : > { %597 = vmatmul.msk.bf16.vlgmr.msra.gmra.mxu0 %vm391_vm5, %v370_v31 }
 0x19a   : > { %v404_v33 = vpop.f32.mrf.mxu0 }
 0x19b   : > { %v405_v34 = vadd.f32 %v637_v32, %v404_v33 }
 0x19d   : > { %429 = vrot.lane.b32.xlu1 %v405_v34, %s662_s25  ;;  %v598_v36 = vmul.f32 -1.442695, %v405_v34 }
 0x19f   : > { %645 = vpow2.f32 %v598_v36 }
 0x1a2   : > { %v406_v35 = vpop.f32.mrf.mxu0 }
 0x1a5   : > { %v646_v37 = vpop.eup %645 }
 0x1a6   : > { %v411_v38 = vadd.f32 1.0, %v646_v37 }
 0x1a8   : > { %647 = vrcp.f32 %v411_v38  ;;  %v423_v44 = vand.u32 2147483648, %v411_v38  ;;  %vm417_vm7 = vweird.f32 %v411_v38  ;;  %v421_v45 = vand.u32 2147483647, %v411_v38 }
 0x1a9   : > { %649 = vrcp.f32 %v663_v53 }
 0x1aa   : > { %v424_v47 = vor.u32 1.1754944e-38, %v423_v44  ;;  %vm422_vm9 = vcmp.eq.f32.partialorder %v421_v45, 8.507059e+37 }
 0x1ae   : > { %v648_v39 = vpop.eup %647 }
 0x1af   : > { %v413_v40 = vmul.f32 %v648_v39, %v411_v38  ;;  %vm418_vm6 = vweird.f32 %v648_v39  ;;  %v650_v54 = vpop.eup %649 }
 0x1b0   : > { %vm419_vm8 = vmor %vm417_vm7, %vm418_vm6  ;;  %v440_v55 = vmul.f32 64.0, %v650_v54  ;;  %vm444_vm11 = vweird.f32 %v650_v54 }
 0x1b1   : > { %v414_v41 = vsub.f32 1.0, %v413_v40 }
 0x1b2   : > { %v441_v56 = vsub.f32 1.0, %v440_v55 }
 0x1b3   : > { %v415_v42 = vmul.f32 %v648_v39, %v414_v41 }
 0x1b4   : > { %v442_v57 = vmul.f32 %v650_v54, %v441_v56 }
 0x1b5   : > { %v416_v43 = vadd.f32 %v648_v39, %v415_v42 }
 0x1b6   : > { %v443_v58 = vadd.f32 %v650_v54, %v442_v57 }
 0x1b7   : > { %v420_v46 = vsel %vm419_vm8, %v648_v39, %v416_v43 }
 0x1b8   : > { %v425_v48 = vsel %vm422_vm9, %v424_v47, %v420_v46  ;;  %v445_v59 = vsel %vm444_vm11, %v650_v54, %v443_v58 }
 0x1b9   : > { %v427_v49 = vmul.f32 %v425_v48, %v405_v34 }
 0x20f   : > { %v430_v50 = vpop.permute.xlu1 %429 }
 0x210   : > { %v432_v51 = vmul.f32 %v430_v50, %v427_v49 }
 0x212   : > { %v436_v52 = vsel %vm435_vm10, %v432_v51, 0.0 }
 0x213   : > { %437 = vadd.xlane.f32.xlu1 %v436_v52 }
 0x286   : > { %v438_v60 = vpop.xlane.xlu1 %437 }
 0x287   : > { %v446_v61 = vmul.f32 %v445_v59, %v438_v60 }
 0x289   : > { %v447_v62 = vsub.f32 %v432_v51, %v446_v61 }
 0x28b   : > { %v448_v63 = vmul.f32 %v447_v62, %v447_v62 }
 0x28d   : > { %v449_v1 = vsel %vm435_vm10, %v448_v63, 0.0 }
 0x28e   : > { %450 = vadd.xlane.f32.xlu2 %v449_v1 }
 0x301   : > { %v451_v6 = vpop.xlane.xlu2 %450 }
 0x302   : > { %v452_v7 = vmul.f32 %v451_v6, %v445_v59 }
 0x304   : > { %v453_v8 = vadd.f32 1e-06, %v452_v7 }
 0x306   : > { %651 = vrsqrt.f32 %v453_v8  ;;  %vm460_vm13 = vweird.f32 %v453_v8 }
 0x30c   : > { %v652_v9 = vpop.eup %651 }
 0x30d   : > { %v455_v10 = vmul.f32 %v652_v9, %v453_v8  ;;  %vm461_vm12 = vweird.f32 %v652_v9 }
 0x30e   : > { %vm462_vm14 = vmor %vm460_vm13, %vm461_vm12 }
 0x30f   : > { %v456_v11 = vmul.f32 %v652_v9, %v455_v10 }
 0x311   : > { %v457_v12 = vmul.f32 0.5, %v456_v11 }
 0x313   : > { %v458_v13 = vsub.f32 1.5, %v457_v12 }
 0x315   : > { %v459_v14 = vmul.f32 %v652_v9, %v458_v13 }
 0x317   : > { %v463_v16 = vsel %vm462_vm14, %v652_v9, %v459_v14 }
 0x318   : > { %v464_v17 = vmul.f32 %v463_v16, %v447_v62 }
 0x31a   : > { %v468_v19 = vmul.f32 %v638_v15, %v464_v17 }
 0x31c   : > { %v472_v20 = vadd.f32 %v639_v18, %v468_v19 }
 0x31e   : > { %v473_v21 = vpack.c.bf16 %v472_v20, %v472_v20 }
 0x320   : > { %615 = vmatmul.msk.bf16.vlgmr.msra.gmra.mxu1 %vm510_vm15, %v473_v21 }
 0x39d   : > { %v523_v23 = vpop.f32.mrf.mxu1 }
 0x39e   : > { %v524_v24 = vadd.f32 %v640_v22, %v523_v23 }
 0x3a0   : > { %v527_v25 = vadd.f32 %v524_v24, %v730_v0 }
 0x3a2   : > { %528 = vst.msk [vmem:[%s327_s24] sm:$0x1f] %vm332_vm0, %v527_v25 }
 0x3a5   : > { %v525_v26 = vpop.f32.mrf.mxu1 }
 0x3a6 PF: > { %s19_s30 = sadd.s32 1, %s659_s30  }
 0x3a7   : > { %p16_p4 = scmp.ge.s32.totalorder %s19_s30, 4  }
 0x3a9   :  { %18 = sbr.rel (!%p16_p4) target bundleno = 1 (0x1), region = 86 }

// kernel: eva02_forward.7
= control target key start
LH: loop header
LB: loop body
LE: loop exit
PB: predicated region body
PF: predicated region fallthrough
CT: control target
= control target key end

     0   :  { %s889_s24 = smov 0   ;;  %s983_s0 = inlined_call_operand.vmem [shape: f32[2,5,32], index: 0, kind: input, shape index: {}]   ;;  %s984_s1 = inlined_call_operand.vmem [shape: f32[1,32], index: 1, kind: input, shape index: {}]   ;;  %s985_s2 = inlined_call_operand.vmem [shape: f32[1,32], index: 2, kind: input, shape index: {}]   ;;  %s986_s3 = inlined_call_operand.vmem [shape: bf16[32,96], index: 3, kind: input, shape index: {}]   ;;  %s987_s4 = inlined_call_operand.vmem [shape: f32[1,96], index: 4, kind: input, shape index: {}]   ;;  %s988_s5 = inlined_call_operand.vmem [shape: bf16[32,32], index: 5, kind: input, shape index: {}]   ;;  %s989_s6 = inlined_call_operand.vmem [shape: f32[1,32], index: 6, kind: input, shape index: {}]   ;;  %s990_s7 = inlined_call_operand.vmem [shape: f32[2,5,32], index: 7, kind: output, shape index: {}]  }
   0x1 LB: > { %s732_s25 = sadd.s32 4294967295, %s832_s24   ;;  %p736_p0 = scmp.ge.s32.totalorder %s832_s24, 1  ;;  %s832_s24 = sphi %s889_s24, %s17_s24  }
   0x2   : > { %p236_p1 = scmp.lt.s32.totalorder %s832_s24, 3 }
   0x4   : > { %p237_p2 = pnand %p736_p0, %p236_p1 }
   0x5   : > { %p266_p3 = scmp.lt.s32.totalorder (!%p237_p2), %s732_s25, 1  ;;  %s835_s17 = smov (!%p237_p2), 64  }
   0x6   : > { %240 = sbr.rel (%p237_p2) target bundleno = 1699 (0x6a3), region = 48  ;;  %s836_s18 = smov (!%p237_p2), 96  }
   0x7   : > { %s837_s19 = smov (!%p237_p2), 120   ;;  %s838_s20 = smov (!%p237_p2), 80  }
   0x8   : > { %s839_s21 = smov (!%p237_p2), 88   ;;  %s840_s22 = smov (!%p237_p2), 56  }
   0x9   : > { %s841_s23 = smov (!%p237_p2), 112   ;;  %s842_s27 = smov (!%p237_p2), 72  }
   0xa   : > { %s843_s28 = smov (!%p237_p2), 104   ;;  %s845_s30 = smov (!%p237_p2), 48  }
   0xb   : > { %s992_s25 = smov (!%p266_p3, %s732_s25), 1  ;;  %vm278_vm0 = vcmask 258048   ;;  %v834_v2 = vmov 32.0   ;;  %v776_v14 = vld [vmem:[%s986_s3 + $0x8] sm:$0xff]  ;;  %v775_v15 = vld [vmem:[%s986_s3] sm:$0xff]  ;;  %vm337_vm5 = vcmask 261120  }
   0xc   : > { %s737_s26 = sshll.u32 %s992_s25, 3  ;;  %806 = vrcp.f32 %v834_v2  ;;  %347 = vmatpush.bf16.msra.mxu0 %v776_v14  ;;  %v802_v25 = vld [vmem:[%s984_s1] ss:$0 sm:$0xff]  ;;  %vm358_vm6 = vcmask 64512   ;;  %vm402_vm7 = vcmask 1044480   ;;  %vm384_vm8 = vcmask 36864  }
   0xd   : > { %s269_s29 = scalar_lea.vmem %s983_s0, %s737_s26  ;;  %v803_v28 = vld [vmem:[%s985_s2] ss:$0 sm:$0xff]  ;;  %vm398_vm9 = vcmask 39936   ;;  %s846_s8 = smov 40   ;;  %vm636_vm10 = vcmask 130048   ;;  %vm638_vm11 = vcmask 195584  }
   0xe   : > { %v905_v0 = vld [vmem:[%s269_s29] sm:$0x1f]  ;;  %s844_s29 = smov 8   ;;  %s847_s9 = smov 16  }
   0xf   : > { %v279_v1 = vsel %vm278_vm0, %v905_v0, 0.0  ;;  %v804_v32 = vld [vmem:[%s987_s4] ss:$0 sm:$0xff]  ;;  %s848_s12 = smov 24  }
  0x10   : > { %280 = vadd.xlane.f32.xlu0 %v279_v1  ;;  %348 = vmatpush.bf16.msra.mxu0 %v775_v15 }
  0x12   : > { %v807_v3 = vpop.eup %806 }
  0x13   : > { %v283_v4 = vmul.f32 32.0, %v807_v3  ;;  %vm287_vm1 = vweird.f32 %v807_v3 }
  0x15   : > { %v284_v5 = vsub.f32 1.0, %v283_v4 }
  0x17   : > { %v285_v6 = vmul.f32 %v807_v3, %v284_v5 }
  0x19   : > { %v286_v7 = vadd.f32 %v807_v3, %v285_v6 }
  0x1b   : > { %v288_v8 = vsel %vm287_vm1, %v807_v3, %v286_v7 }
  0x83   : > { %v281_v9 = vpop.xlane.xlu0 %280 }
  0x84   : > { %v289_v10 = vmul.f32 %v288_v8, %v281_v9 }
  0x86   : > { %v290_v11 = vsub.f32 %v905_v0, %v289_v10 }
  0x88   : > { %v291_v12 = vmul.f32 %v290_v11, %v290_v11 }
  0x8a   : > { %v292_v13 = vsel %vm278_vm0, %v291_v12, 0.0 }
  0x8b   : > { %293 = vadd.xlane.f32.xlu0 %v292_v13 }
  0xfe   : > { %v294_v16 = vpop.xlane.xlu0 %293 }
  0xff   : > { %v295_v17 = vmul.f32 %v294_v16, %v288_v8 }
 0x101   : > { %v296_v18 = vadd.f32 1e-06, %v295_v17 }
 0x103   : > { %808 = vrsqrt.f32 %v296_v18  ;;  %vm303_vm3 = vweird.f32 %v296_v18 }
 0x109   : > { %v809_v19 = vpop.eup %808 }
 0x10a   : > { %v298_v20 = vmul.f32 %v809_v19, %v296_v18  ;;  %vm304_vm2 = vweird.f32 %v809_v19 }
 0x10b   : > { %vm305_vm4 = vmor %vm303_vm3, %vm304_vm2 }
 0x10c   : > { %v299_v21 = vmul.f32 %v809_v19, %v298_v20 }
 0x10e   : > { %v300_v22 = vmul.f32 0.5, %v299_v21 }
 0x110   : > { %v301_v23 = vsub.f32 1.5, %v300_v22 }
 0x112   : > { %v302_v24 = vmul.f32 %v809_v19, %v301_v23 }
 0x114   : > { %v306_v26 = vsel %vm305_vm4, %v809_v19, %v302_v24 }
 0x115   : > { %v307_v27 = vmul.f32 %v306_v26, %v290_v11 }
 0x117   : > { %v311_v29 = vmul.f32 %v802_v25, %v307_v27 }
 0x119   : > { %v315_v30 = vadd.f32 %v803_v28, %v311_v29  ;;  %v778_v28 = vld [vmem:[%s988_s5 + $0x8] sm:$0xff] }
 0x11b   : > { %v316_v31 = vpack.c.bf16 %v315_v30, %v315_v30  ;;  %v777_v30 = vld [vmem:[%s988_s5] sm:$0xff] }
 0x11d   : > { %747 = vmatmul.msk.bf16.vlgmr.msra.gmra.mxu0 %vm337_vm5, %v316_v31 }
 0x19a   : > { %v350_v33 = vpop.f32.mrf.mxu0 }
 0x19b   : > { %v927_v34 = vadd.f32 %v804_v32, %v350_v33 }
 0x19d   : > { %396 = vrot.lane.b32.xlu0 %v927_v34, %s835_s17  ;;  %356 = vrot.lane.b32.xlu1 %v927_v34, %s836_s18  ;;  %v354_v35 = vmul.f32 0.35355338, %v927_v34 }
 0x19f   : > { %425 = vrot.lane.b32.xlu2 %v354_v35, %s837_s19  ;;  %s273_s19 = scalar_lea.vmem %s990_s7, %s737_s26 }
 0x1a2   : > { %v352_v36 = vpop.f32.mrf.mxu0 }
 0x1a5   : > { %493 = vrot.lane.b32.xlu0 %v927_v34, %s838_s20  ;;  %427 = vrot.lane.b32.xlu1 %v927_v34, %s839_s21 }
 0x1f9   : > { %v426_v41 = vpop.permute.xlu2 %425 }
 0x20f   : > { %v397_v37 = vpop.permute.xlu0 %396  ;;  %v357_v38 = vpop.permute.xlu1 %356 }
 0x210   : > { %748 = vmatpush.xpose.msk.msra.mxu1 %vm358_vm6, %v357_v38  ;;  %750 = vmatpush.msk.msra.mxu2 %vm402_vm7, %v397_v37  ;;  %v805_v38 = vld [vmem:[%s989_s6] ss:$0 sm:$0xff] }
 0x213   : > { %749 = vmatmul.msk.f32.vlgmr.msra.gmra.mxu1 %vm358_vm6, %v354_v35 }
 0x217   : > { %v494_v39 = vpop.permute.xlu0 %493  ;;  %v428_v40 = vpop.permute.xlu1 %427 }
 0x218   : > { %752 = vmatpush.xpose.msk.msrb.mxu0 %vm358_vm6, %v428_v40  ;;  %756 = vmatpush.xpose.msk.msrb.mxu1 %vm358_vm6, %v494_v39 }
 0x21b   : > { %753 = vmatmul.msk.f32.vlgmr.msrb.gmra.mxu0 %vm358_vm6, %v426_v41 }
 0x290   : > { %v381_v42 = vpop.f32.mrf.mxu1 }
 0x291   : > { %v385_v43 = vsel %vm384_vm8, %v381_v42, -inf }
 0x292   : > { %386 = vmax.xlane.f32.xlu2 %v385_v43 }
 0x298   : > { %v450_v44 = vpop.f32.mrf.mxu0 }
 0x299   : > { %v453_v45 = vsel %vm384_vm8, %v450_v44, -inf }
 0x29a   : > { %454 = vmax.xlane.f32.xlu0 %v453_v45 }
 0x2aa   : > { %464 = vrot.lane.b32.xlu2 %v927_v34, %s840_s22 }
 0x2ae   : > { %491 = vrot.lane.b32.xlu0 %v354_v35, %s841_s23 }
 0x305   : > { %v387_v46 = vpop.xlane.xlu2 %386 }
 0x306   : > { %v388_v47 = vsub.f32 %v381_v42, %v387_v46 }
 0x308   : > { %v389_v48 = vmul.f32 1.442695, %v388_v47 }
 0x30a   : > { %810 = vpow2.f32 %v389_v48 }
 0x30d   : > { %v455_v49 = vpop.xlane.xlu0 %454  ;;  %v465_v50 = vpop.permute.xlu2 %464 }
 0x30e   : > { %v456_v51 = vsub.f32 %v450_v44, %v455_v49  ;;  %754 = vmatpush.msk.msrb.mxu2 %vm402_vm7, %v465_v50 }
 0x310   : > { %v811_v52 = vpop.eup %810  ;;  %v457_v53 = vmul.f32 1.442695, %v456_v51 }
 0x311   : > { %v391_v54 = vsel %vm384_vm8, %v811_v52, 0.0 }
 0x312   : > { %812 = vpow2.f32 %v457_v53  ;;  %392 = vadd.xlane.f32.xlu1 %v391_v54 }
 0x318   : > { %v813_v55 = vpop.eup %812 }
 0x319   : > { %v459_v56 = vsel %vm384_vm8, %v813_v55, 0.0 }
 0x31a   : > { %460 = vadd.xlane.f32.xlu0 %v459_v56 }
 0x320   : > { %v492_v57 = vpop.permute.xlu0 %491 }
 0x321   : > { %757 = vmatmul.msk.f32.vlgmr.msrb.gmra.mxu1 %vm358_vm6, %v492_v57 }
 0x32b   : > { %559 = vrot.lane.b32.xlu1 %v927_v34, %s842_s27 }
 0x32e   : > { %557 = vrot.lane.b32.xlu0 %v354_v35, %s843_s28 }
 0x385   : > { %v393_v58 = vpop.xlane.xlu1 %392 }
 0x386   : > { %814 = vrcp.f32 %v393_v58 }
 0x38c   : > { %v815_v59 = vpop.eup %814 }
 0x38d   : > { %v461_v60 = vpop.xlane.xlu0 %460  ;;  %v395_v61 = vmul.f32 %v815_v59, %v811_v52 }
 0x38e   : > { %816 = vrcp.f32 %v461_v60 }
 0x38f   : > { %751 = vmatmul.msk.f32.vlgmr.msra.gmra.mxu2 %vm398_vm9, %v395_v61 }
 0x394   : > { %v817_v62 = vpop.eup %816 }
 0x395   : > { %v463_v63 = vmul.f32 %v817_v62, %v813_v55 }
 0x397   : > { %755 = vmatmul.msk.f32.vlgmr.msrb.gmra.mxu2 %vm398_vm9, %v463_v63 }
 0x39d   : > { %v560_v1 = vpop.permute.xlu1 %559 }
 0x39e   : > { %v516_v2 = vpop.f32.mrf.mxu1  ;;  %760 = vmatpush.xpose.msk.msra.mxu2 %vm358_vm6, %v560_v1 }
 0x39f   : > { %v519_v3 = vsel %vm384_vm8, %v516_v2, -inf }
 0x3a0   : > { %v558_v4 = vpop.permute.xlu0 %557  ;;  %520 = vmax.xlane.f32.xlu2 %v519_v3 }
 0x3a1   : > { %761 = vmatmul.msk.f32.vlgmr.msra.gmra.mxu2 %vm358_vm6, %v558_v4 }
 0x412   : > { %v422_v5 = vpop.f32.mrf.mxu2 }
 0x413   : > { %v521_v6 = vpop.xlane.xlu2 %520 }
 0x414   : > { %v522_v7 = vsub.f32 %v516_v2, %v521_v6 }
 0x416   : > { %v523_v8 = vmul.f32 1.442695, %v522_v7 }
 0x418   : > { %818 = vpow2.f32 %v523_v8 }
 0x41a   : > { %v488_v9 = vpop.f32.mrf.mxu2 }
 0x41e   : > { %v819_v10 = vpop.eup %818 }
 0x41f   : > { %v525_v11 = vsel %vm384_vm8, %v819_v10, 0.0 }
 0x420   : > { %526 = vadd.xlane.f32.xlu1 %v525_v11 }
 0x424   : > { %v582_v12 = vpop.f32.mrf.mxu2 }
 0x425   : > { %v585_v13 = vsel %vm384_vm8, %v582_v12, -inf }
 0x426   : > { %586 = vmax.xlane.f32.xlu0 %v585_v13 }
 0x439   : > { %624 = vrot.lane.b32.xlu1 %v488_v9, %s844_s29 }
 0x43a   : > { %530 = vrot.lane.b32.xlu0 %v927_v34, %s845_s30 }
 0x493   : > { %v527_v17 = vpop.xlane.xlu1 %526 }
 0x499   : > { %v587_v14 = vpop.xlane.xlu0 %586 }
 0x49a   : > { %v588_v15 = vsub.f32 %v582_v12, %v587_v14 }
 0x49c   : > { %v589_v16 = vmul.f32 1.442695, %v588_v15 }
 0x49e   : > { %820 = vpow2.f32 %v589_v16 }
 0x49f   : > { %822 = vrcp.f32 %v527_v17 }
 0x4a4   : > { %v821_v18 = vpop.eup %820 }
 0x4a5   : > { %v591_v19 = vsel %vm384_vm8, %v821_v18, 0.0  ;;  %v823_v20 = vpop.eup %822 }
 0x4a6   : > { %592 = vadd.xlane.f32.xlu2 %v591_v19  ;;  %v529_v22 = vmul.f32 %v823_v20, %v819_v10 }
 0x4ab   : > { %v625_v32 = vpop.permute.xlu1 %624 }
 0x4ac   : > { %v531_v21 = vpop.permute.xlu0 %530  ;;  %v635_v33 = vsel %vm358_vm6, %v422_v5, %v625_v32 }
 0x4ad   : > { %758 = vmatpush.msk.msra.mxu3 %vm402_vm7, %v531_v21 }
 0x4ae   : > { %759 = vmatmul.msk.f32.vlgmr.msra.gmra.mxu3 %vm398_vm9, %v529_v22 }
 0x4af   : > { %670 = vmatpush.bf16.msrb.mxu3 %v778_v28 }
 0x4b3   : > { %671 = vmatpush.bf16.msrb.mxu3 %v777_v30 }
 0x4be   : > { %596 = vrot.lane.b32.xlu2 %v927_v34, %s846_s8 }
 0x519   : > { %v593_v23 = vpop.xlane.xlu2 %592 }
 0x51a   : > { %824 = vrcp.f32 %v593_v23 }
 0x520   : > { %v825_v24 = vpop.eup %824 }
 0x521   : > { %v595_v25 = vmul.f32 %v825_v24, %v821_v18  ;;  %v597_v26 = vpop.permute.xlu2 %596 }
 0x522   : > { %762 = vmatpush.msk.msra.mxu1 %vm402_vm7, %v597_v26 }
 0x523   : > { %763 = vmatmul.msk.f32.vlgmr.msra.gmra.mxu1 %vm398_vm9, %v595_v25 }
 0x531   : > { %v554_v27 = vpop.f32.mrf.mxu3 }
 0x532   : > { %628 = vrot.lane.b32.xlu0 %v554_v27, %s847_s9 }
 0x5a0   : > { %v620_v29 = vpop.f32.mrf.mxu1 }
 0x5a1   : > { %632 = vrot.lane.b32.xlu0 %v620_v29, %s848_s12 }
 0x5a4   : > { %v629_v31 = vpop.permute.xlu0 %628 }
 0x5a5   : > { %v637_v34 = vsel %vm636_vm10, %v635_v33, %v629_v31 }
 0x613   : > { %v633_v35 = vpop.permute.xlu0 %632 }
 0x614   : > { %v639_v36 = vsel %vm638_vm11, %v637_v34, %v633_v35 }
 0x615   : > { %v640_v37 = vpack.c.bf16 %v639_v36, %v639_v36 }
 0x617   : > { %772 = vmatmul.msk.bf16.vlgmr.msrb.gmra.mxu3 %vm337_vm5, %v640_v37 }
 0x69a   : > { %v673_v39 = vpop.f32.mrf.mxu3 }
 0x69b   : > { %v674_v40 = vadd.f32 %v805_v38, %v673_v39 }
 0x69d   : > { %v677_v41 = vadd.f32 %v674_v40, %v905_v0 }
 0x69f   : > { %678 = vst.msk [vmem:[%s273_s19] sm:$0x1f] %vm278_vm0, %v677_v41 }
 0x6a2   : > { %v675_v42 = vpop.f32.mrf.mxu3 }
 0x6a3 PF: > { %s17_s24 = sadd.s32 1, %s832_s24  }
 0x6a4   : > { %p14_p4 = scmp.ge.s32.totalorder %s17_s24, 4  }
 0x6a6   :  { %16 = sbr.rel (!%p14_p4) target bundleno = 1 (0x1), region = 78 }

</bundles_post_ra>
